<compile_context>
chip_gen: v7x
topology: tpu7x:2x2x1
jax: 0.10.0
libtpu: 0.0.40
codegen_flags: <defaults>
</compile_context>

<pallas_src>
from dataclasses import dataclass

import jax
import jax.numpy as jnp
from jax.experimental import pallas as pl
from jax.experimental.pallas import tpu as pltpu


# ----------------------------- tiling helpers ------------------------------

def _vmem_limit_bytes() -> int:
    """Generation-aware VMEM limit: ~3/4 of physical, capped at 100 MiB.

    v5e/v6e have 128 MiB physical (-> 96 MiB), v7x has 64 MiB (-> 48 MiB).
    Falls back to a conservative 48 MiB if the query is unavailable.
    """
    cap = 64 * 1024 * 1024
    try:
        cap = int(getattr(pltpu.get_tpu_info(), "vmem_capacity_bytes", cap))
    except Exception:
        pass
    return int(min(cap * 3 // 4, 100 * 1024 * 1024))


def _pick_tn(cout: int, tn_max: int) -> int:
    """Output-channel tile: full Cout when it fits, else a 128-multiple divisor."""
    if cout <= tn_max:
        return cout
    t = (tn_max // 128) * 128
    while t >= 128:
        if cout % t == 0:
            return t
        t -= 128
    return cout  # degenerate fallback: full-dim block


def _pick_tr(R, Wo, K2, tn, *, tm_max, budget_bytes, act_bytes=2):
    """Rows-of-Ho tile (tr).  The matmul M tile is tm = tr * Wo."""
    def vmem_need(tr):
        tm = tr * Wo
        return (2 * tm * K2 * act_bytes      # x blocks (double-buffered)
                + 2 * K2 * tn * act_bytes    # w blocks (double-buffered)
                + tm * K2 * act_bytes        # xs flatten scratch
                + tm * tn * 4                # f32 accumulator
                + 2 * tm * tn * act_bytes    # out blocks (double-buffered)
                + 2 * tn * 4)                # bias blocks

    divisors = [d for d in range(1, R + 1) if R % d == 0]
    # Output-tile sublane rule: tm rows must be a multiple of 8 (or the full M dim).
    legal = [d for d in divisors if (d * Wo) % 8 == 0 or d == R]
    fitting = [d for d in legal if d * Wo <= tm_max and vmem_need(d) <= budget_bytes]
    if not fitting:
        fitting = [min(legal)]
    # Prefer bf16 sublane-packed tile heights (multiples of 16 rows), then largest.
    packed = [d for d in fitting if (d * Wo) % 16 == 0]
    tr = max(packed) if packed else max(fitting)
    # v7x megacore: keep >=2 blocks on the parallel M axis when the tile can
    # stay MXU-friendly (>=128 rows).  Free on v5e/v6e (single TensorCore).
    if R // tr < 2:
        split = [d for d in fitting if d < tr and d * Wo >= 128]
        if split:
            tr = max(split)
    return tr


# ----------------------------- Pallas kernel -------------------------------

def _stage_kernel(x_ref, w_ref, b_ref, o_ref, xs_ref, acc_ref):
    """One (tm, tn) tile of relu(patches @ W + b), reduced over the kh grid axis.

    x_ref : (tr, Wo, kw*Cin) bf16   activation slab for this kh (kh squeezed)
    w_ref : (kw*Cin, tn)     bf16   weight slice for this kh     (kh squeezed)
    b_ref : (1, tn)          f32
    o_ref : (tm, tn)         bf16   tm = tr * Wo
    xs_ref: (tm, kw*Cin)     bf16   VMEM scratch for the row flatten
    acc_ref:(tm, tn)         f32    resident accumulator
    """
    kh = pl.program_id(2)

    @pl.when(kh == 0)
    def _init():
        acc_ref[...] = jnp.zeros_like(acc_ref)

    tr, wo, _ = x_ref.shape
    # Flatten (tr rows x Wo positions) into matmul rows with cheap VMEM->VMEM
    # row-group copies (static offsets, unrolled at trace time; Wo is even so
    # every bf16 store is sublane-word aligned).  This replaces the previous
    # HBM-materialized XLA im2col transpose.
    for r in range(tr):
        xs_ref[r * wo:(r + 1) * wo, :] = x_ref[r]

    # bf16 x bf16 -> f32 on the MXU, accumulated in the resident VMEM scratch.
    acc_ref[...] += jnp.dot(xs_ref[...], w_ref[...],
                            preferred_element_type=jnp.float32)

    @pl.when(kh == pl.num_programs(2) - 1)
    def _epilogue():
        # Bias + ReLU once per output tile; single lane-dense bf16 store.
        o_ref[...] = jnp.maximum(acc_ref[...] + b_ref[...], 0.0).astype(o_ref.dtype)


# ----------------------------- wrappers ------------------------------------

def _patch_matmul_bias_relu(x4, w, b, *, tm_max=1024, tn_max=512,
                            out_dtype=jnp.bfloat16):
    """relu(patches @ W + b) over a (N*Ho, kh, Wo, kw*Cin) activation view.

    x4: (R, s, Wo, K2) bf16 (free view of the NHWC activation), w: (s, K2, Cout)
    bf16, b: (1, Cout) f32.  Returns (R*Wo, Cout) bf16.
    """
    R, s, Wo, K2 = x4.shape
    Cout = w.shape[2]
    assert w.shape == (s, K2, Cout) and b.shape == (1, Cout)
    if x4.dtype != w.dtype:
        x4 = x4.astype(w.dtype)

    vmem_limit = _vmem_limit_bytes()
    tn = _pick_tn(Cout, tn_max)
    tr = _pick_tr(R, Wo, K2, tn, tm_max=tm_max, budget_bytes=vmem_limit // 2,
                  act_bytes=jnp.dtype(x4.dtype).itemsize)
    tm = tr * Wo
    grid = (R // tr, Cout // tn, s)              # reduction axis (kh) last

    m_rows, k_full = R * Wo, s * K2
    cost = pl.CostEstimate(
        flops=2 * m_rows * k_full * Cout,
        transcendentals=0,
        bytes_accessed=(R * s * Wo * K2 * 2 * (Cout // tn)   # activations
                        + s * K2 * Cout * 2 * (R // tr)      # weights
                        + m_rows * Cout * 2                  # bf16 output
                        + Cout * 4),                         # bias
    )

    out = pl.pallas_call(
        _stage_kernel,
        out_shape=jax.ShapeDtypeStruct((m_rows, Cout), out_dtype),
        grid=grid,
        in_specs=[
            # kh is a squeezed (size-1) block dim selected by the reduction axis,
            # so each DMA brings a contiguous (tr, Wo, kw*Cin) HBM slab.
            pl.BlockSpec((tr, None, Wo, K2), lambda i, j, k: (i, k, 0, 0)),
            pl.BlockSpec((None, K2, tn), lambda i, j, k: (k, 0, j)),
            pl.BlockSpec((1, tn), lambda i, j, k: (0, j)),
        ],
        out_specs=pl.BlockSpec((tm, tn), lambda i, j, k: (i, j)),
        scratch_shapes=[
            pltpu.VMEM((tm, K2), x4.dtype),      # flattened-patch scratch
            pltpu.VMEM((tm, tn), jnp.float32),   # f32 accumulator
        ],
        compiler_params=pltpu.CompilerParams(
            dimension_semantics=("parallel", "parallel", "arbitrary"),
            vmem_limit_bytes=vmem_limit,
        ),
        cost_estimate=cost,
    )(x4, w, b)
    return out


def _patch_conv_nhwc(x_nhwc, w, b, stride):
    """Strided conv with kernel_size == stride on NHWC input -> NHWC bf16 output."""
    N, H, W, C = x_nhwc.shape
    s = stride
    assert H % s == 0 and W % s == 0, "spatial dims must be divisible by stride"
    Ho, Wo = H // s, W // s
    assert Wo % 2 == 0, "output width must be even (bf16 row packing in kernel)"
    R, K2, Cout = N * Ho, s * C, w.shape[2]
    # Free (no-copy) view: (N,H,W,C) -> (N*Ho, kh, Wo, kw*C).  No im2col
    # transpose is materialized; the kernel's BlockSpec + in-VMEM flatten do
    # the patch gather.
    x4 = x_nhwc.reshape(R, s, Wo, K2)
    out2d = _patch_matmul_bias_relu(x4, w, b)    # (N*Ho*Wo, Cout) bf16
    return out2d.reshape(N, Ho, Wo, Cout)        # free split of the row dim


def _downsample_mask(mask_bool, Ho, Wo):
    """Exact F.interpolate(m[None].float(), size=(Ho, Wo)).to(bool)[0] for
    integer downsample factors: nearest picks src index floor(i*H/Ho) = i*sh,
    i.e. a strided slice (a Pallas kernel here would be pure DMA overhead)."""
    N, H, W = mask_bool.shape
    assert H % Ho == 0 and W % Wo == 0, "mask dims must be integer multiples"
    sh, sw = H // Ho, W // Wo
    return mask_bool[:, ::sh, ::sw]


# ----------------------------- module --------------------------------------

@dataclass
class NestedTensor:
    tensors: jax.Array
    mask: jax.Array


class BackboneBase:
    """JAX/Pallas port of the PyTorch BackboneBase forward pass.

    The ResNet body is replaced by a small synthetic 3-stage strided-conv body
    ("layer2"/"layer3"/"layer4" with overall strides 8/16/32).  Stage channel
    widths are multiples of 128 (128/256/512, scaled-down stand-ins for
    512/1024/2048) so every output tile is lane-dense with zero Cout padding.
    Activations are bf16 between stages (f32 accumulation in-kernel), so
    results are close to but not bit-identical to an f32 PyTorch conv.
    """
    # TODO(synk): the full ResNet-50 body (and requires_grad freezing) has no
    # clean Pallas equivalent here; a synthetic patchify-conv body stands in.

    def __init__(self, train_backbone: bool, return_interm_layers: bool,
                 key, in_channels: int = 4, stage_channels=(128, 256, 512)):
        c2, c3, c4 = stage_channels
        if return_interm_layers:
            self.return_layers = {"layer2": "0", "layer3": "1", "layer4": "2"}
            self.strides = [8, 16, 32]
            self.num_channels = [c2, c3, c4]     # stand-ins for [512, 1024, 2048]
        else:
            self.return_layers = {"layer4": "0"}
            self.strides = [32]
            self.num_channels = [c4]             # stand-in for [2048]
        self.stage_strides = {"layer2": 8, "layer3": 2, "layer4": 2}
        k2, k3, k4 = jax.random.split(key, 3)
        self.params = {
            "layer2": self._init_stage(k2, in_channels, c2, 8),
            "layer3": self._init_stage(k3, c2, c3, 2),
            "layer4": self._init_stage(k4, c3, c4, 2),
        }
        self.train_backbone = train_backbone     # only affects grads in torch; no-op here
        self._body = jax.jit(self._body_impl)    # fuses entry transpose + free views

    @staticmethod
    def _init_stage(key, cin, cout, s):
        fan_in = cin * s * s
        # Weight pre-shaped/pre-cast ONCE at init: (kh, kw*cin, cout) bf16 ready
        # for the kernel's per-kh slices; bias stored as a (1, cout) f32 row.
        w = jax.random.normal(key, (s, s * cin, cout), jnp.float32) * (2.0 / fan_in) ** 0.5
        return {"w": w.astype(jnp.bfloat16), "b": jnp.zeros((1, cout), jnp.float32)}

    def _body_impl(self, x_nchw, params):
        # one NCHW->NHWC transpose + bf16 cast at entry; NHWC bf16 between stages.
        x = jnp.transpose(x_nchw, (0, 2, 3, 1)).astype(jnp.bfloat16)
        feats = {}
        for lname in ("layer2", "layer3", "layer4"):
            p = params[lname]
            x = _patch_conv_nhwc(x, p["w"], p["b"], self.stage_strides[lname])
            if lname in self.return_layers:
                # back to NCHW only at the API boundary
                feats[self.return_layers[lname]] = jnp.transpose(x, (0, 3, 1, 2))
        return feats

    def forward(self, tensor_list: NestedTensor):
        m = tensor_list.mask
        assert m is not None
        feats = self._body(tensor_list.tensors, self.params)
        out = {}
        for name, xf in feats.items():
            Ho, Wo = xf.shape[-2], xf.shape[-1]
            out[name] = NestedTensor(xf, _downsample_mask(m, Ho, Wo))
        return out


# ----------------------------- main ----------------------------------------

if __name__ == "__main__":
    key = jax.random.PRNGKey(0)
    kx, kp = jax.random.split(key)

    # layout: NCHW image batch + (N, H, W) bool padding mask (True = padded).
    N, C, H, W = 2, 4, 64, 64
    x = jax.random.normal(kx, (N, C, H, W), jnp.float32)
    mask = jnp.zeros((N, H, W), dtype=jnp.bool_)
    mask = mask.at[0, 48:, :].set(True).at[1, :, 40:].set(True)

    model = BackboneBase(train_backbone=True, return_interm_layers=True, key=kp)
    out = model.forward(NestedTensor(x, mask))

    # --- test-only pure-JAX reference (materialized im2col; not the fast path) ---
    def ref_features(x_nchw, params, strides, return_layers):
        xr = jnp.transpose(x_nchw, (0, 2, 3, 1)).astype(jnp.bfloat16)
        feats = {}
        for lname in ("layer2", "layer3", "layer4"):
            w, b, s = params[lname]["w"], params[lname]["b"], strides[lname]
            n_, h_, w_, c_ = xr.shape
            ho_, wo_ = h_ // s, w_ // s
            p = xr.reshape(n_, ho_, s, wo_, s, c_).transpose(0, 1, 3, 2, 4, 5)
            patches = p.reshape(n_ * ho_ * wo_, s * s * c_).astype(jnp.float32)
            wf = w.reshape(s * s * c_, -1).astype(jnp.float32)
            y = jnp.maximum(patches @ wf + b.astype(jnp.float32), 0.0)
            xr = y.reshape(n_, ho_, wo_, -1).astype(jnp.bfloat16)
            if lname in return_layers:
                feats[return_layers[lname]] = jnp.transpose(xr, (0, 3, 1, 2))
        return feats

    ref = ref_features(x, model.params, model.stage_strides, model.return_layers)

    expected = {"0": (N, 128, 8, 8), "1": (N, 256, 4, 4), "2": (N, 512, 2, 2)}
    for name in sorted(out):
        nt = out[name]
        jax.block_until_ready(nt.tensors)
        jax.block_until_ready(nt.mask)
        assert nt.tensors.shape == expected[name]
        assert nt.mask.shape == (N,) + nt.tensors.shape[-2:]
        assert nt.mask.dtype == jnp.bool_
        assert bool(jnp.all(nt.tensors >= 0.0))          # ReLU epilogue
        assert bool(jnp.any(nt.tensors > 0.0))           # kernel actually computed
        ok = jnp.allclose(nt.tensors.astype(jnp.float32),
                          ref[name].astype(jnp.float32), rtol=5e-2, atol=5e-2)
        assert bool(ok), f"feature {name} mismatch vs reference"

    print("KERNEL_OK")
</pallas_src>

<mosaic_0001>
module attributes {stable_mosaic.version = 11 : i64} {
  func.func @_stage_kernel(%arg0: i32, %arg1: i32, %arg2: i32, %arg3: memref<16x1x8x32xbf16, #tpu.memory_space<vmem>>, %arg4: memref<1x32x128xbf16, #tpu.memory_space<vmem>>, %arg5: memref<1x128xf32, #tpu.memory_space<vmem>>, %arg6: memref<128x128xbf16, #tpu.memory_space<vmem>>, %arg7: memref<128x32xbf16, #tpu.memory_space<vmem>>, %arg8: memref<128x128xf32, #tpu.memory_space<vmem>>) attributes {dimension_semantics = [#tpu.dimension_semantics<parallel>, #tpu.dimension_semantics<parallel>, #tpu.dimension_semantics<arbitrary>], iteration_bounds = array<i64: 1, 1, 8>, scalar_prefetch = 0 : i64, scratch_operands = 2 : i64, tpu.core_type = #tpu.core_type<tc>, window_params = [{transform_indices = @transform_0, window_bounds = array<i64: 16, 1, 8, 32>}, {transform_indices = @transform_1, window_bounds = array<i64: 1, 32, 128>}, {transform_indices = @transform_2, window_bounds = array<i64: 1, 128>}, {transform_indices = @transform_3, window_bounds = array<i64: 128, 128>}]} {
    %c0_i32 = arith.constant 0 : i32
    %0 = arith.cmpi eq, %arg2, %c0_i32 : i32
    %1 = arith.extui %0 : i1 to i32
    %c0_i32_0 = arith.constant 0 : i32
    %2 = arith.cmpi ne, %1, %c0_i32_0 : i32
    scf.if %2 {
      %cst_77 = arith.constant 0.000000e+00 : f32
      %61 = vector.broadcast %cst_77 : f32 to vector<128x128xf32>
      %c0_78 = arith.constant 0 : index
      %c0_79 = arith.constant 0 : index
      %62 = vector.load %arg8[%c0_78, %c0_79] : memref<128x128xf32, #tpu.memory_space<vmem>>, vector<128x128xf32>
      tpu.vector_store %arg8[%c0_78, %c0_79], %61 {strides = array<i32>} : memref<128x128xf32, #tpu.memory_space<vmem>>, vector<128x128xf32>,
    } else {
    }
    %c0 = arith.constant 0 : index
    %c0_1 = arith.constant 0 : index
    %c0_2 = arith.constant 0 : index
    %c0_3 = arith.constant 0 : index
    %3 = vector.load %arg3[%c0, %c0_1, %c0_2, %c0_3] : memref<16x1x8x32xbf16, #tpu.memory_space<vmem>>, vector<1x1x8x32xbf16>
    %4 = vector.shape_cast %3 : vector<1x1x8x32xbf16> to vector<8x32xbf16>
    %c0_4 = arith.constant 0 : index
    %c0_5 = arith.constant 0 : index
    %5 = vector.load %arg7[%c0_4, %c0_5] : memref<128x32xbf16, #tpu.memory_space<vmem>>, vector<8x32xbf16>
    tpu.vector_store %arg7[%c0_4, %c0_5], %4 {strides = array<i32>} : memref<128x32xbf16, #tpu.memory_space<vmem>>, vector<8x32xbf16>,
    %c1 = arith.constant 1 : index
    %c0_6 = arith.constant 0 : index
    %c0_7 = arith.constant 0 : index
    %c0_8 = arith.constant 0 : index
    %6 = vector.load %arg3[%c1, %c0_6, %c0_7, %c0_8] : memref<16x1x8x32xbf16, #tpu.memory_space<vmem>>, vector<1x1x8x32xbf16>
    %7 = vector.shape_cast %6 : vector<1x1x8x32xbf16> to vector<8x32xbf16>
    %c8 = arith.constant 8 : index
    %c0_9 = arith.constant 0 : index
    %8 = vector.load %arg7[%c8, %c0_9] : memref<128x32xbf16, #tpu.memory_space<vmem>>, vector<8x32xbf16>
    tpu.vector_store %arg7[%c8, %c0_9], %7 {strides = array<i32>} : memref<128x32xbf16, #tpu.memory_space<vmem>>, vector<8x32xbf16>,
    %c2 = arith.constant 2 : index
    %c0_10 = arith.constant 0 : index
    %c0_11 = arith.constant 0 : index
    %c0_12 = arith.constant 0 : index
    %9 = vector.load %arg3[%c2, %c0_10, %c0_11, %c0_12] : memref<16x1x8x32xbf16, #tpu.memory_space<vmem>>, vector<1x1x8x32xbf16>
    %10 = vector.shape_cast %9 : vector<1x1x8x32xbf16> to vector<8x32xbf16>
    %c16 = arith.constant 16 : index
    %c0_13 = arith.constant 0 : index
    %11 = vector.load %arg7[%c16, %c0_13] : memref<128x32xbf16, #tpu.memory_space<vmem>>, vector<8x32xbf16>
    tpu.vector_store %arg7[%c16, %c0_13], %10 {strides = array<i32>} : memref<128x32xbf16, #tpu.memory_space<vmem>>, vector<8x32xbf16>,
    %c3 = arith.constant 3 : index
    %c0_14 = arith.constant 0 : index
    %c0_15 = arith.constant 0 : index
    %c0_16 = arith.constant 0 : index
    %12 = vector.load %arg3[%c3, %c0_14, %c0_15, %c0_16] : memref<16x1x8x32xbf16, #tpu.memory_space<vmem>>, vector<1x1x8x32xbf16>
    %13 = vector.shape_cast %12 : vector<1x1x8x32xbf16> to vector<8x32xbf16>
    %c24 = arith.constant 24 : index
    %c0_17 = arith.constant 0 : index
    %14 = vector.load %arg7[%c24, %c0_17] : memref<128x32xbf16, #tpu.memory_space<vmem>>, vector<8x32xbf16>
    tpu.vector_store %arg7[%c24, %c0_17], %13 {strides = array<i32>} : memref<128x32xbf16, #tpu.memory_space<vmem>>, vector<8x32xbf16>,
    %c4 = arith.constant 4 : index
    %c0_18 = arith.constant 0 : index
    %c0_19 = arith.constant 0 : index
    %c0_20 = arith.constant 0 : index
    %15 = vector.load %arg3[%c4, %c0_18, %c0_19, %c0_20] : memref<16x1x8x32xbf16, #tpu.memory_space<vmem>>, vector<1x1x8x32xbf16>
    %16 = vector.shape_cast %15 : vector<1x1x8x32xbf16> to vector<8x32xbf16>
    %c32 = arith.constant 32 : index
    %c0_21 = arith.constant 0 : index
    %17 = vector.load %arg7[%c32, %c0_21] : memref<128x32xbf16, #tpu.memory_space<vmem>>, vector<8x32xbf16>
    tpu.vector_store %arg7[%c32, %c0_21], %16 {strides = array<i32>} : memref<128x32xbf16, #tpu.memory_space<vmem>>, vector<8x32xbf16>,
    %c5 = arith.constant 5 : index
    %c0_22 = arith.constant 0 : index
    %c0_23 = arith.constant 0 : index
    %c0_24 = arith.constant 0 : index
    %18 = vector.load %arg3[%c5, %c0_22, %c0_23, %c0_24] : memref<16x1x8x32xbf16, #tpu.memory_space<vmem>>, vector<1x1x8x32xbf16>
    %19 = vector.shape_cast %18 : vector<1x1x8x32xbf16> to vector<8x32xbf16>
    %c40 = arith.constant 40 : index
    %c0_25 = arith.constant 0 : index
    %20 = vector.load %arg7[%c40, %c0_25] : memref<128x32xbf16, #tpu.memory_space<vmem>>, vector<8x32xbf16>
    tpu.vector_store %arg7[%c40, %c0_25], %19 {strides = array<i32>} : memref<128x32xbf16, #tpu.memory_space<vmem>>, vector<8x32xbf16>,
    %c6 = arith.constant 6 : index
    %c0_26 = arith.constant 0 : index
    %c0_27 = arith.constant 0 : index
    %c0_28 = arith.constant 0 : index
    %21 = vector.load %arg3[%c6, %c0_26, %c0_27, %c0_28] : memref<16x1x8x32xbf16, #tpu.memory_space<vmem>>, vector<1x1x8x32xbf16>
    %22 = vector.shape_cast %21 : vector<1x1x8x32xbf16> to vector<8x32xbf16>
    %c48 = arith.constant 48 : index
    %c0_29 = arith.constant 0 : index
    %23 = vector.load %arg7[%c48, %c0_29] : memref<128x32xbf16, #tpu.memory_space<vmem>>, vector<8x32xbf16>
    tpu.vector_store %arg7[%c48, %c0_29], %22 {strides = array<i32>} : memref<128x32xbf16, #tpu.memory_space<vmem>>, vector<8x32xbf16>,
    %c7 = arith.constant 7 : index
    %c0_30 = arith.constant 0 : index
    %c0_31 = arith.constant 0 : index
    %c0_32 = arith.constant 0 : index
    %24 = vector.load %arg3[%c7, %c0_30, %c0_31, %c0_32] : memref<16x1x8x32xbf16, #tpu.memory_space<vmem>>, vector<1x1x8x32xbf16>
    %25 = vector.shape_cast %24 : vector<1x1x8x32xbf16> to vector<8x32xbf16>
    %c56 = arith.constant 56 : index
    %c0_33 = arith.constant 0 : index
    %26 = vector.load %arg7[%c56, %c0_33] : memref<128x32xbf16, #tpu.memory_space<vmem>>, vector<8x32xbf16>
    tpu.vector_store %arg7[%c56, %c0_33], %25 {strides = array<i32>} : memref<128x32xbf16, #tpu.memory_space<vmem>>, vector<8x32xbf16>,
    %c8_34 = arith.constant 8 : index
    %c0_35 = arith.constant 0 : index
    %c0_36 = arith.constant 0 : index
    %c0_37 = arith.constant 0 : index
    %27 = vector.load %arg3[%c8_34, %c0_35, %c0_36, %c0_37] : memref<16x1x8x32xbf16, #tpu.memory_space<vmem>>, vector<1x1x8x32xbf16>
    %28 = vector.shape_cast %27 : vector<1x1x8x32xbf16> to vector<8x32xbf16>
    %c64 = arith.constant 64 : index
    %c0_38 = arith.constant 0 : index
    %29 = vector.load %arg7[%c64, %c0_38] : memref<128x32xbf16, #tpu.memory_space<vmem>>, vector<8x32xbf16>
    tpu.vector_store %arg7[%c64, %c0_38], %28 {strides = array<i32>} : memref<128x32xbf16, #tpu.memory_space<vmem>>, vector<8x32xbf16>,
    %c9 = arith.constant 9 : index
    %c0_39 = arith.constant 0 : index
    %c0_40 = arith.constant 0 : index
    %c0_41 = arith.constant 0 : index
    %30 = vector.load %arg3[%c9, %c0_39, %c0_40, %c0_41] : memref<16x1x8x32xbf16, #tpu.memory_space<vmem>>, vector<1x1x8x32xbf16>
    %31 = vector.shape_cast %30 : vector<1x1x8x32xbf16> to vector<8x32xbf16>
    %c72 = arith.constant 72 : index
    %c0_42 = arith.constant 0 : index
    %32 = vector.load %arg7[%c72, %c0_42] : memref<128x32xbf16, #tpu.memory_space<vmem>>, vector<8x32xbf16>
    tpu.vector_store %arg7[%c72, %c0_42], %31 {strides = array<i32>} : memref<128x32xbf16, #tpu.memory_space<vmem>>, vector<8x32xbf16>,
    %c10 = arith.constant 10 : index
    %c0_43 = arith.constant 0 : index
    %c0_44 = arith.constant 0 : index
    %c0_45 = arith.constant 0 : index
    %33 = vector.load %arg3[%c10, %c0_43, %c0_44, %c0_45] : memref<16x1x8x32xbf16, #tpu.memory_space<vmem>>, vector<1x1x8x32xbf16>
    %34 = vector.shape_cast %33 : vector<1x1x8x32xbf16> to vector<8x32xbf16>
    %c80 = arith.constant 80 : index
    %c0_46 = arith.constant 0 : index
    %35 = vector.load %arg7[%c80, %c0_46] : memref<128x32xbf16, #tpu.memory_space<vmem>>, vector<8x32xbf16>
    tpu.vector_store %arg7[%c80, %c0_46], %34 {strides = array<i32>} : memref<128x32xbf16, #tpu.memory_space<vmem>>, vector<8x32xbf16>,
    %c11 = arith.constant 11 : index
    %c0_47 = arith.constant 0 : index
    %c0_48 = arith.constant 0 : index
    %c0_49 = arith.constant 0 : index
    %36 = vector.load %arg3[%c11, %c0_47, %c0_48, %c0_49] : memref<16x1x8x32xbf16, #tpu.memory_space<vmem>>, vector<1x1x8x32xbf16>
    %37 = vector.shape_cast %36 : vector<1x1x8x32xbf16> to vector<8x32xbf16>
    %c88 = arith.constant 88 : index
    %c0_50 = arith.constant 0 : index
    %38 = vector.load %arg7[%c88, %c0_50] : memref<128x32xbf16, #tpu.memory_space<vmem>>, vector<8x32xbf16>
    tpu.vector_store %arg7[%c88, %c0_50], %37 {strides = array<i32>} : memref<128x32xbf16, #tpu.memory_space<vmem>>, vector<8x32xbf16>,
    %c12 = arith.constant 12 : index
    %c0_51 = arith.constant 0 : index
    %c0_52 = arith.constant 0 : index
    %c0_53 = arith.constant 0 : index
    %39 = vector.load %arg3[%c12, %c0_51, %c0_52, %c0_53] : memref<16x1x8x32xbf16, #tpu.memory_space<vmem>>, vector<1x1x8x32xbf16>
    %40 = vector.shape_cast %39 : vector<1x1x8x32xbf16> to vector<8x32xbf16>
    %c96 = arith.constant 96 : index
    %c0_54 = arith.constant 0 : index
    %41 = vector.load %arg7[%c96, %c0_54] : memref<128x32xbf16, #tpu.memory_space<vmem>>, vector<8x32xbf16>
    tpu.vector_store %arg7[%c96, %c0_54], %40 {strides = array<i32>} : memref<128x32xbf16, #tpu.memory_space<vmem>>, vector<8x32xbf16>,
    %c13 = arith.constant 13 : index
    %c0_55 = arith.constant 0 : index
    %c0_56 = arith.constant 0 : index
    %c0_57 = arith.constant 0 : index
    %42 = vector.load %arg3[%c13, %c0_55, %c0_56, %c0_57] : memref<16x1x8x32xbf16, #tpu.memory_space<vmem>>, vector<1x1x8x32xbf16>
    %43 = vector.shape_cast %42 : vector<1x1x8x32xbf16> to vector<8x32xbf16>
    %c104 = arith.constant 104 : index
    %c0_58 = arith.constant 0 : index
    %44 = vector.load %arg7[%c104, %c0_58] : memref<128x32xbf16, #tpu.memory_space<vmem>>, vector<8x32xbf16>
    tpu.vector_store %arg7[%c104, %c0_58], %43 {strides = array<i32>} : memref<128x32xbf16, #tpu.memory_space<vmem>>, vector<8x32xbf16>,
    %c14 = arith.constant 14 : index
    %c0_59 = arith.constant 0 : index
    %c0_60 = arith.constant 0 : index
    %c0_61 = arith.constant 0 : index
    %45 = vector.load %arg3[%c14, %c0_59, %c0_60, %c0_61] : memref<16x1x8x32xbf16, #tpu.memory_space<vmem>>, vector<1x1x8x32xbf16>
    %46 = vector.shape_cast %45 : vector<1x1x8x32xbf16> to vector<8x32xbf16>
    %c112 = arith.constant 112 : index
    %c0_62 = arith.constant 0 : index
    %47 = vector.load %arg7[%c112, %c0_62] : memref<128x32xbf16, #tpu.memory_space<vmem>>, vector<8x32xbf16>
    tpu.vector_store %arg7[%c112, %c0_62], %46 {strides = array<i32>} : memref<128x32xbf16, #tpu.memory_space<vmem>>, vector<8x32xbf16>,
    %c15 = arith.constant 15 : index
    %c0_63 = arith.constant 0 : index
    %c0_64 = arith.constant 0 : index
    %c0_65 = arith.constant 0 : index
    %48 = vector.load %arg3[%c15, %c0_63, %c0_64, %c0_65] : memref<16x1x8x32xbf16, #tpu.memory_space<vmem>>, vector<1x1x8x32xbf16>
    %49 = vector.shape_cast %48 : vector<1x1x8x32xbf16> to vector<8x32xbf16>
    %c120 = arith.constant 120 : index
    %c0_66 = arith.constant 0 : index
    %50 = vector.load %arg7[%c120, %c0_66] : memref<128x32xbf16, #tpu.memory_space<vmem>>, vector<8x32xbf16>
    tpu.vector_store %arg7[%c120, %c0_66], %49 {strides = array<i32>} : memref<128x32xbf16, #tpu.memory_space<vmem>>, vector<8x32xbf16>,
    %c0_67 = arith.constant 0 : index
    %c0_68 = arith.constant 0 : index
    %51 = vector.load %arg8[%c0_67, %c0_68] : memref<128x128xf32, #tpu.memory_space<vmem>>, vector<128x128xf32>
    %c0_69 = arith.constant 0 : index
    %c0_70 = arith.constant 0 : index
    %52 = vector.load %arg7[%c0_69, %c0_70] : memref<128x32xbf16, #tpu.memory_space<vmem>>, vector<128x32xbf16>
    %c0_71 = arith.constant 0 : index
    %c0_72 = arith.constant 0 : index
    %c0_73 = arith.constant 0 : index
    %53 = vector.load %arg4[%c0_71, %c0_72, %c0_73] : memref<1x32x128xbf16, #tpu.memory_space<vmem>>, vector<1x32x128xbf16>
    %54 = vector.shape_cast %53 : vector<1x32x128xbf16> to vector<32x128xbf16>
    %cst = arith.constant dense<0.000000e+00> : vector<128x128xf32>
    %55 = tpu.matmul %52, %54, %cst {dimension_numbers = #tpu.dot_dimension_numbers<[1], [0], [0], [1], [0, 0, 1, 1], [], []>} : vector<128x32xbf16>, vector<32x128xbf16>, vector<128x128xf32> -> vector<128x128xf32>
    %56 = arith.addf %51, %55 : vector<128x128xf32>
    %c0_74 = arith.constant 0 : index
    %c0_75 = arith.constant 0 : index
    %57 = vector.load %arg8[%c0_74, %c0_75] : memref<128x128xf32, #tpu.memory_space<vmem>>, vector<128x128xf32>
    tpu.vector_store %arg8[%c0_74, %c0_75], %56 {strides = array<i32>} : memref<128x128xf32, #tpu.memory_space<vmem>>, vector<128x128xf32>,
    %c7_i32 = arith.constant 7 : i32
    %58 = arith.cmpi eq, %arg2, %c7_i32 : i32
    %59 = arith.extui %58 : i1 to i32
    %c0_i32_76 = arith.constant 0 : i32
    %60 = arith.cmpi ne, %59, %c0_i32_76 : i32
    scf.if %60 {
      %c0_77 = arith.constant 0 : index
      %c0_78 = arith.constant 0 : index
      %61 = vector.load %arg8[%c0_77, %c0_78] : memref<128x128xf32, #tpu.memory_space<vmem>>, vector<128x128xf32>
      %c0_79 = arith.constant 0 : index
      %c0_80 = arith.constant 0 : index
      %62 = vector.load %arg5[%c0_79, %c0_80] : memref<1x128xf32, #tpu.memory_space<vmem>>, vector<1x128xf32>
      %63 = vector.broadcast %62 : vector<1x128xf32> to vector<128x128xf32>
      %64 = arith.addf %61, %63 : vector<128x128xf32>
      %cst_81 = arith.constant 0.000000e+00 : f32
      %65 = vector.broadcast %cst_81 : f32 to vector<128x128xf32>
      %66 = arith.maximumf %64, %65 : vector<128x128xf32>
      %67 = arith.truncf %66 : vector<128x128xf32> to vector<128x128xbf16>
      %c0_82 = arith.constant 0 : index
      %c0_83 = arith.constant 0 : index
      %68 = vector.load %arg6[%c0_82, %c0_83] : memref<128x128xbf16, #tpu.memory_space<vmem>>, vector<128x128xbf16>
      tpu.vector_store %arg6[%c0_82, %c0_83], %67 {strides = array<i32>} : memref<128x128xbf16, #tpu.memory_space<vmem>>, vector<128x128xbf16>,
    } else {
    }
    return
  }
  func.func @transform_0(%arg0: i32, %arg1: i32, %arg2: i32) -> (i32, i32, i32, i32) {
    %c0_i32 = arith.constant 0 : i32
    %c0_i32_0 = arith.constant 0 : i32
    %c0_i32_1 = arith.constant 0 : i32
    return %arg0, %arg2, %c0_i32, %c0_i32_0 : i32, i32, i32, i32
  }
  func.func @transform_1(%arg0: i32, %arg1: i32, %arg2: i32) -> (i32, i32, i32) {
    %c0_i32 = arith.constant 0 : i32
    %c0_i32_0 = arith.constant 0 : i32
    return %arg2, %c0_i32, %arg1 : i32, i32, i32
  }
  func.func @transform_2(%arg0: i32, %arg1: i32, %arg2: i32) -> (i32, i32) {
    %c0_i32 = arith.constant 0 : i32
    %c0_i32_0 = arith.constant 0 : i32
    return %c0_i32, %arg1 : i32, i32
  }
  func.func @transform_3(%arg0: i32, %arg1: i32, %arg2: i32) -> (i32, i32) {
    %c0_i32 = arith.constant 0 : i32
    return %arg0, %arg1 : i32, i32
  }
}

module attributes {stable_mosaic.version = 11 : i64} {
  func.func @_stage_kernel(%arg0: i32, %arg1: i32, %arg2: i32, %arg3: memref<8x1x4x256xbf16, #tpu.memory_space<vmem>>, %arg4: memref<1x256x256xbf16, #tpu.memory_space<vmem>>, %arg5: memref<1x256xf32, #tpu.memory_space<vmem>>, %arg6: memref<32x256xbf16, #tpu.memory_space<vmem>>, %arg7: memref<32x256xbf16, #tpu.memory_space<vmem>>, %arg8: memref<32x256xf32, #tpu.memory_space<vmem>>) attributes {dimension_semantics = [#tpu.dimension_semantics<parallel>, #tpu.dimension_semantics<parallel>, #tpu.dimension_semantics<arbitrary>], iteration_bounds = array<i64: 1, 1, 2>, scalar_prefetch = 0 : i64, scratch_operands = 2 : i64, tpu.core_type = #tpu.core_type<tc>, window_params = [{transform_indices = @transform_0, window_bounds = array<i64: 8, 1, 4, 256>}, {transform_indices = @transform_1, window_bounds = array<i64: 1, 256, 256>}, {transform_indices = @transform_2, window_bounds = array<i64: 1, 256>}, {transform_indices = @transform_3, window_bounds = array<i64: 32, 256>}]} {
    %c0_i32 = arith.constant 0 : i32
    %0 = arith.cmpi eq, %arg2, %c0_i32 : i32
    %1 = arith.extui %0 : i1 to i32
    %c0_i32_0 = arith.constant 0 : i32
    %2 = arith.cmpi ne, %1, %c0_i32_0 : i32
    scf.if %2 {
      %cst_45 = arith.constant 0.000000e+00 : f32
      %37 = vector.broadcast %cst_45 : f32 to vector<32x256xf32>
      %c0_46 = arith.constant 0 : index
      %c0_47 = arith.constant 0 : index
      %38 = vector.load %arg8[%c0_46, %c0_47] : memref<32x256xf32, #tpu.memory_space<vmem>>, vector<32x256xf32>
      tpu.vector_store %arg8[%c0_46, %c0_47], %37 {strides = array<i32>} : memref<32x256xf32, #tpu.memory_space<vmem>>, vector<32x256xf32>,
    } else {
    }
    %c0 = arith.constant 0 : index
    %c0_1 = arith.constant 0 : index
    %c0_2 = arith.constant 0 : index
    %c0_3 = arith.constant 0 : index
    %3 = vector.load %arg3[%c0, %c0_1, %c0_2, %c0_3] : memref<8x1x4x256xbf16, #tpu.memory_space<vmem>>, vector<1x1x4x256xbf16>
    %4 = vector.shape_cast %3 : vector<1x1x4x256xbf16> to vector<4x256xbf16>
    %c0_4 = arith.constant 0 : index
    %c0_5 = arith.constant 0 : index
    %5 = vector.load %arg7[%c0_4, %c0_5] : memref<32x256xbf16, #tpu.memory_space<vmem>>, vector<4x256xbf16>
    tpu.vector_store %arg7[%c0_4, %c0_5], %4 {strides = array<i32>} : memref<32x256xbf16, #tpu.memory_space<vmem>>, vector<4x256xbf16>,
    %c1 = arith.constant 1 : index
    %c0_6 = arith.constant 0 : index
    %c0_7 = arith.constant 0 : index
    %c0_8 = arith.constant 0 : index
    %6 = vector.load %arg3[%c1, %c0_6, %c0_7, %c0_8] : memref<8x1x4x256xbf16, #tpu.memory_space<vmem>>, vector<1x1x4x256xbf16>
    %7 = vector.shape_cast %6 : vector<1x1x4x256xbf16> to vector<4x256xbf16>
    %c4 = arith.constant 4 : index
    %c0_9 = arith.constant 0 : index
    %8 = vector.load %arg7[%c4, %c0_9] : memref<32x256xbf16, #tpu.memory_space<vmem>>, vector<4x256xbf16>
    tpu.vector_store %arg7[%c4, %c0_9], %7 {strides = array<i32>} : memref<32x256xbf16, #tpu.memory_space<vmem>>, vector<4x256xbf16>,
    %c2 = arith.constant 2 : index
    %c0_10 = arith.constant 0 : index
    %c0_11 = arith.constant 0 : index
    %c0_12 = arith.constant 0 : index
    %9 = vector.load %arg3[%c2, %c0_10, %c0_11, %c0_12] : memref<8x1x4x256xbf16, #tpu.memory_space<vmem>>, vector<1x1x4x256xbf16>
    %10 = vector.shape_cast %9 : vector<1x1x4x256xbf16> to vector<4x256xbf16>
    %c8 = arith.constant 8 : index
    %c0_13 = arith.constant 0 : index
    %11 = vector.load %arg7[%c8, %c0_13] : memref<32x256xbf16, #tpu.memory_space<vmem>>, vector<4x256xbf16>
    tpu.vector_store %arg7[%c8, %c0_13], %10 {strides = array<i32>} : memref<32x256xbf16, #tpu.memory_space<vmem>>, vector<4x256xbf16>,
    %c3 = arith.constant 3 : index
    %c0_14 = arith.constant 0 : index
    %c0_15 = arith.constant 0 : index
    %c0_16 = arith.constant 0 : index
    %12 = vector.load %arg3[%c3, %c0_14, %c0_15, %c0_16] : memref<8x1x4x256xbf16, #tpu.memory_space<vmem>>, vector<1x1x4x256xbf16>
    %13 = vector.shape_cast %12 : vector<1x1x4x256xbf16> to vector<4x256xbf16>
    %c12 = arith.constant 12 : index
    %c0_17 = arith.constant 0 : index
    %14 = vector.load %arg7[%c12, %c0_17] : memref<32x256xbf16, #tpu.memory_space<vmem>>, vector<4x256xbf16>
    tpu.vector_store %arg7[%c12, %c0_17], %13 {strides = array<i32>} : memref<32x256xbf16, #tpu.memory_space<vmem>>, vector<4x256xbf16>,
    %c4_18 = arith.constant 4 : index
    %c0_19 = arith.constant 0 : index
    %c0_20 = arith.constant 0 : index
    %c0_21 = arith.constant 0 : index
    %15 = vector.load %arg3[%c4_18, %c0_19, %c0_20, %c0_21] : memref<8x1x4x256xbf16, #tpu.memory_space<vmem>>, vector<1x1x4x256xbf16>
    %16 = vector.shape_cast %15 : vector<1x1x4x256xbf16> to vector<4x256xbf16>
    %c16 = arith.constant 16 : index
    %c0_22 = arith.constant 0 : index
    %17 = vector.load %arg7[%c16, %c0_22] : memref<32x256xbf16, #tpu.memory_space<vmem>>, vector<4x256xbf16>
    tpu.vector_store %arg7[%c16, %c0_22], %16 {strides = array<i32>} : memref<32x256xbf16, #tpu.memory_space<vmem>>, vector<4x256xbf16>,
    %c5 = arith.constant 5 : index
    %c0_23 = arith.constant 0 : index
    %c0_24 = arith.constant 0 : index
    %c0_25 = arith.constant 0 : index
    %18 = vector.load %arg3[%c5, %c0_23, %c0_24, %c0_25] : memref<8x1x4x256xbf16, #tpu.memory_space<vmem>>, vector<1x1x4x256xbf16>
    %19 = vector.shape_cast %18 : vector<1x1x4x256xbf16> to vector<4x256xbf16>
    %c20 = arith.constant 20 : index
    %c0_26 = arith.constant 0 : index
    %20 = vector.load %arg7[%c20, %c0_26] : memref<32x256xbf16, #tpu.memory_space<vmem>>, vector<4x256xbf16>
    tpu.vector_store %arg7[%c20, %c0_26], %19 {strides = array<i32>} : memref<32x256xbf16, #tpu.memory_space<vmem>>, vector<4x256xbf16>,
    %c6 = arith.constant 6 : index
    %c0_27 = arith.constant 0 : index
    %c0_28 = arith.constant 0 : index
    %c0_29 = arith.constant 0 : index
    %21 = vector.load %arg3[%c6, %c0_27, %c0_28, %c0_29] : memref<8x1x4x256xbf16, #tpu.memory_space<vmem>>, vector<1x1x4x256xbf16>
    %22 = vector.shape_cast %21 : vector<1x1x4x256xbf16> to vector<4x256xbf16>
    %c24 = arith.constant 24 : index
    %c0_30 = arith.constant 0 : index
    %23 = vector.load %arg7[%c24, %c0_30] : memref<32x256xbf16, #tpu.memory_space<vmem>>, vector<4x256xbf16>
    tpu.vector_store %arg7[%c24, %c0_30], %22 {strides = array<i32>} : memref<32x256xbf16, #tpu.memory_space<vmem>>, vector<4x256xbf16>,
    %c7 = arith.constant 7 : index
    %c0_31 = arith.constant 0 : index
    %c0_32 = arith.constant 0 : index
    %c0_33 = arith.constant 0 : index
    %24 = vector.load %arg3[%c7, %c0_31, %c0_32, %c0_33] : memref<8x1x4x256xbf16, #tpu.memory_space<vmem>>, vector<1x1x4x256xbf16>
    %25 = vector.shape_cast %24 : vector<1x1x4x256xbf16> to vector<4x256xbf16>
    %c28 = arith.constant 28 : index
    %c0_34 = arith.constant 0 : index
    %26 = vector.load %arg7[%c28, %c0_34] : memref<32x256xbf16, #tpu.memory_space<vmem>>, vector<4x256xbf16>
    tpu.vector_store %arg7[%c28, %c0_34], %25 {strides = array<i32>} : memref<32x256xbf16, #tpu.memory_space<vmem>>, vector<4x256xbf16>,
    %c0_35 = arith.constant 0 : index
    %c0_36 = arith.constant 0 : index
    %27 = vector.load %arg8[%c0_35, %c0_36] : memref<32x256xf32, #tpu.memory_space<vmem>>, vector<32x256xf32>
    %c0_37 = arith.constant 0 : index
    %c0_38 = arith.constant 0 : index
    %28 = vector.load %arg7[%c0_37, %c0_38] : memref<32x256xbf16, #tpu.memory_space<vmem>>, vector<32x256xbf16>
    %c0_39 = arith.constant 0 : index
    %c0_40 = arith.constant 0 : index
    %c0_41 = arith.constant 0 : index
    %29 = vector.load %arg4[%c0_39, %c0_40, %c0_41] : memref<1x256x256xbf16, #tpu.memory_space<vmem>>, vector<1x256x256xbf16>
    %30 = vector.shape_cast %29 : vector<1x256x256xbf16> to vector<256x256xbf16>
    %cst = arith.constant dense<0.000000e+00> : vector<32x256xf32>
    %31 = tpu.matmul %28, %30, %cst {dimension_numbers = #tpu.dot_dimension_numbers<[1], [0], [0], [1], [0, 0, 1, 1], [], []>} : vector<32x256xbf16>, vector<256x256xbf16>, vector<32x256xf32> -> vector<32x256xf32>
    %32 = arith.addf %27, %31 : vector<32x256xf32>
    %c0_42 = arith.constant 0 : index
    %c0_43 = arith.constant 0 : index
    %33 = vector.load %arg8[%c0_42, %c0_43] : memref<32x256xf32, #tpu.memory_space<vmem>>, vector<32x256xf32>
    tpu.vector_store %arg8[%c0_42, %c0_43], %32 {strides = array<i32>} : memref<32x256xf32, #tpu.memory_space<vmem>>, vector<32x256xf32>,
    %c1_i32 = arith.constant 1 : i32
    %34 = arith.cmpi eq, %arg2, %c1_i32 : i32
    %35 = arith.extui %34 : i1 to i32
    %c0_i32_44 = arith.constant 0 : i32
    %36 = arith.cmpi ne, %35, %c0_i32_44 : i32
    scf.if %36 {
      %c0_45 = arith.constant 0 : index
      %c0_46 = arith.constant 0 : index
      %37 = vector.load %arg8[%c0_45, %c0_46] : memref<32x256xf32, #tpu.memory_space<vmem>>, vector<32x256xf32>
      %c0_47 = arith.constant 0 : index
      %c0_48 = arith.constant 0 : index
      %38 = vector.load %arg5[%c0_47, %c0_48] : memref<1x256xf32, #tpu.memory_space<vmem>>, vector<1x256xf32>
      %39 = vector.broadcast %38 : vector<1x256xf32> to vector<32x256xf32>
      %40 = arith.addf %37, %39 : vector<32x256xf32>
      %cst_49 = arith.constant 0.000000e+00 : f32
      %41 = vector.broadcast %cst_49 : f32 to vector<32x256xf32>
      %42 = arith.maximumf %40, %41 : vector<32x256xf32>
      %43 = arith.truncf %42 : vector<32x256xf32> to vector<32x256xbf16>
      %c0_50 = arith.constant 0 : index
      %c0_51 = arith.constant 0 : index
      %44 = vector.load %arg6[%c0_50, %c0_51] : memref<32x256xbf16, #tpu.memory_space<vmem>>, vector<32x256xbf16>
      tpu.vector_store %arg6[%c0_50, %c0_51], %43 {strides = array<i32>} : memref<32x256xbf16, #tpu.memory_space<vmem>>, vector<32x256xbf16>,
    } else {
    }
    return
  }
  func.func @transform_0(%arg0: i32, %arg1: i32, %arg2: i32) -> (i32, i32, i32, i32) {
    %c0_i32 = arith.constant 0 : i32
    %c0_i32_0 = arith.constant 0 : i32
    %c0_i32_1 = arith.constant 0 : i32
    return %arg0, %arg2, %c0_i32, %c0_i32_0 : i32, i32, i32, i32
  }
  func.func @transform_1(%arg0: i32, %arg1: i32, %arg2: i32) -> (i32, i32, i32) {
    %c0_i32 = arith.constant 0 : i32
    %c0_i32_0 = arith.constant 0 : i32
    return %arg2, %c0_i32, %arg1 : i32, i32, i32
  }
  func.func @transform_2(%arg0: i32, %arg1: i32, %arg2: i32) -> (i32, i32) {
    %c0_i32 = arith.constant 0 : i32
    %c0_i32_0 = arith.constant 0 : i32
    return %c0_i32, %arg1 : i32, i32
  }
  func.func @transform_3(%arg0: i32, %arg1: i32, %arg2: i32) -> (i32, i32) {
    %c0_i32 = arith.constant 0 : i32
    return %arg0, %arg1 : i32, i32
  }
}

module attributes {stable_mosaic.version = 11 : i64} {
  func.func @_stage_kernel(%arg0: i32, %arg1: i32, %arg2: i32, %arg3: memref<4x1x2x512xbf16, #tpu.memory_space<vmem>>, %arg4: memref<1x512x512xbf16, #tpu.memory_space<vmem>>, %arg5: memref<1x512xf32, #tpu.memory_space<vmem>>, %arg6: memref<8x512xbf16, #tpu.memory_space<vmem>>, %arg7: memref<8x512xbf16, #tpu.memory_space<vmem>>, %arg8: memref<8x512xf32, #tpu.memory_space<vmem>>) attributes {dimension_semantics = [#tpu.dimension_semantics<parallel>, #tpu.dimension_semantics<parallel>, #tpu.dimension_semantics<arbitrary>], iteration_bounds = array<i64: 1, 1, 2>, scalar_prefetch = 0 : i64, scratch_operands = 2 : i64, tpu.core_type = #tpu.core_type<tc>, window_params = [{transform_indices = @transform_0, window_bounds = array<i64: 4, 1, 2, 512>}, {transform_indices = @transform_1, window_bounds = array<i64: 1, 512, 512>}, {transform_indices = @transform_2, window_bounds = array<i64: 1, 512>}, {transform_indices = @transform_3, window_bounds = array<i64: 8, 512>}]} {
    %c0_i32 = arith.constant 0 : i32
    %0 = arith.cmpi eq, %arg2, %c0_i32 : i32
    %1 = arith.extui %0 : i1 to i32
    %c0_i32_0 = arith.constant 0 : i32
    %2 = arith.cmpi ne, %1, %c0_i32_0 : i32
    scf.if %2 {
      %cst_29 = arith.constant 0.000000e+00 : f32
      %25 = vector.broadcast %cst_29 : f32 to vector<8x512xf32>
      %c0_30 = arith.constant 0 : index
      %c0_31 = arith.constant 0 : index
      %26 = vector.load %arg8[%c0_30, %c0_31] : memref<8x512xf32, #tpu.memory_space<vmem>>, vector<8x512xf32>
      tpu.vector_store %arg8[%c0_30, %c0_31], %25 {strides = array<i32>} : memref<8x512xf32, #tpu.memory_space<vmem>>, vector<8x512xf32>,
    } else {
    }
    %c0 = arith.constant 0 : index
    %c0_1 = arith.constant 0 : index
    %c0_2 = arith.constant 0 : index
    %c0_3 = arith.constant 0 : index
    %3 = vector.load %arg3[%c0, %c0_1, %c0_2, %c0_3] : memref<4x1x2x512xbf16, #tpu.memory_space<vmem>>, vector<1x1x2x512xbf16>
    %4 = vector.shape_cast %3 : vector<1x1x2x512xbf16> to vector<2x512xbf16>
    %c0_4 = arith.constant 0 : index
    %c0_5 = arith.constant 0 : index
    %5 = vector.load %arg7[%c0_4, %c0_5] : memref<8x512xbf16, #tpu.memory_space<vmem>>, vector<2x512xbf16>
    tpu.vector_store %arg7[%c0_4, %c0_5], %4 {strides = array<i32>} : memref<8x512xbf16, #tpu.memory_space<vmem>>, vector<2x512xbf16>,
    %c1 = arith.constant 1 : index
    %c0_6 = arith.constant 0 : index
    %c0_7 = arith.constant 0 : index
    %c0_8 = arith.constant 0 : index
    %6 = vector.load %arg3[%c1, %c0_6, %c0_7, %c0_8] : memref<4x1x2x512xbf16, #tpu.memory_space<vmem>>, vector<1x1x2x512xbf16>
    %7 = vector.shape_cast %6 : vector<1x1x2x512xbf16> to vector<2x512xbf16>
    %c2 = arith.constant 2 : index
    %c0_9 = arith.constant 0 : index
    %8 = vector.load %arg7[%c2, %c0_9] : memref<8x512xbf16, #tpu.memory_space<vmem>>, vector<2x512xbf16>
    tpu.vector_store %arg7[%c2, %c0_9], %7 {strides = array<i32>} : memref<8x512xbf16, #tpu.memory_space<vmem>>, vector<2x512xbf16>,
    %c2_10 = arith.constant 2 : index
    %c0_11 = arith.constant 0 : index
    %c0_12 = arith.constant 0 : index
    %c0_13 = arith.constant 0 : index
    %9 = vector.load %arg3[%c2_10, %c0_11, %c0_12, %c0_13] : memref<4x1x2x512xbf16, #tpu.memory_space<vmem>>, vector<1x1x2x512xbf16>
    %10 = vector.shape_cast %9 : vector<1x1x2x512xbf16> to vector<2x512xbf16>
    %c4 = arith.constant 4 : index
    %c0_14 = arith.constant 0 : index
    %11 = vector.load %arg7[%c4, %c0_14] : memref<8x512xbf16, #tpu.memory_space<vmem>>, vector<2x512xbf16>
    tpu.vector_store %arg7[%c4, %c0_14], %10 {strides = array<i32>} : memref<8x512xbf16, #tpu.memory_space<vmem>>, vector<2x512xbf16>,
    %c3 = arith.constant 3 : index
    %c0_15 = arith.constant 0 : index
    %c0_16 = arith.constant 0 : index
    %c0_17 = arith.constant 0 : index
    %12 = vector.load %arg3[%c3, %c0_15, %c0_16, %c0_17] : memref<4x1x2x512xbf16, #tpu.memory_space<vmem>>, vector<1x1x2x512xbf16>
    %13 = vector.shape_cast %12 : vector<1x1x2x512xbf16> to vector<2x512xbf16>
    %c6 = arith.constant 6 : index
    %c0_18 = arith.constant 0 : index
    %14 = vector.load %arg7[%c6, %c0_18] : memref<8x512xbf16, #tpu.memory_space<vmem>>, vector<2x512xbf16>
    tpu.vector_store %arg7[%c6, %c0_18], %13 {strides = array<i32>} : memref<8x512xbf16, #tpu.memory_space<vmem>>, vector<2x512xbf16>,
    %c0_19 = arith.constant 0 : index
    %c0_20 = arith.constant 0 : index
    %15 = vector.load %arg8[%c0_19, %c0_20] : memref<8x512xf32, #tpu.memory_space<vmem>>, vector<8x512xf32>
    %c0_21 = arith.constant 0 : index
    %c0_22 = arith.constant 0 : index
    %16 = vector.load %arg7[%c0_21, %c0_22] : memref<8x512xbf16, #tpu.memory_space<vmem>>, vector<8x512xbf16>
    %c0_23 = arith.constant 0 : index
    %c0_24 = arith.constant 0 : index
    %c0_25 = arith.constant 0 : index
    %17 = vector.load %arg4[%c0_23, %c0_24, %c0_25] : memref<1x512x512xbf16, #tpu.memory_space<vmem>>, vector<1x512x512xbf16>
    %18 = vector.shape_cast %17 : vector<1x512x512xbf16> to vector<512x512xbf16>
    %cst = arith.constant dense<0.000000e+00> : vector<8x512xf32>
    %19 = tpu.matmul %16, %18, %cst {dimension_numbers = #tpu.dot_dimension_numbers<[1], [0], [0], [1], [0, 0, 1, 1], [], []>} : vector<8x512xbf16>, vector<512x512xbf16>, vector<8x512xf32> -> vector<8x512xf32>
    %20 = arith.addf %15, %19 : vector<8x512xf32>
    %c0_26 = arith.constant 0 : index
    %c0_27 = arith.constant 0 : index
    %21 = vector.load %arg8[%c0_26, %c0_27] : memref<8x512xf32, #tpu.memory_space<vmem>>, vector<8x512xf32>
    tpu.vector_store %arg8[%c0_26, %c0_27], %20 {strides = array<i32>} : memref<8x512xf32, #tpu.memory_space<vmem>>, vector<8x512xf32>,
    %c1_i32 = arith.constant 1 : i32
    %22 = arith.cmpi eq, %arg2, %c1_i32 : i32
    %23 = arith.extui %22 : i1 to i32
    %c0_i32_28 = arith.constant 0 : i32
    %24 = arith.cmpi ne, %23, %c0_i32_28 : i32
    scf.if %24 {
      %c0_29 = arith.constant 0 : index
      %c0_30 = arith.constant 0 : index
      %25 = vector.load %arg8[%c0_29, %c0_30] : memref<8x512xf32, #tpu.memory_space<vmem>>, vector<8x512xf32>
      %c0_31 = arith.constant 0 : index
      %c0_32 = arith.constant 0 : index
      %26 = vector.load %arg5[%c0_31, %c0_32] : memref<1x512xf32, #tpu.memory_space<vmem>>, vector<1x512xf32>
      %27 = vector.broadcast %26 : vector<1x512xf32> to vector<8x512xf32>
      %28 = arith.addf %25, %27 : vector<8x512xf32>
      %cst_33 = arith.constant 0.000000e+00 : f32
      %29 = vector.broadcast %cst_33 : f32 to vector<8x512xf32>
      %30 = arith.maximumf %28, %29 : vector<8x512xf32>
      %31 = arith.truncf %30 : vector<8x512xf32> to vector<8x512xbf16>
      %c0_34 = arith.constant 0 : index
      %c0_35 = arith.constant 0 : index
      %32 = vector.load %arg6[%c0_34, %c0_35] : memref<8x512xbf16, #tpu.memory_space<vmem>>, vector<8x512xbf16>
      tpu.vector_store %arg6[%c0_34, %c0_35], %31 {strides = array<i32>} : memref<8x512xbf16, #tpu.memory_space<vmem>>, vector<8x512xbf16>,
    } else {
    }
    return
  }
  func.func @transform_0(%arg0: i32, %arg1: i32, %arg2: i32) -> (i32, i32, i32, i32) {
    %c0_i32 = arith.constant 0 : i32
    %c0_i32_0 = arith.constant 0 : i32
    %c0_i32_1 = arith.constant 0 : i32
    return %arg0, %arg2, %c0_i32, %c0_i32_0 : i32, i32, i32, i32
  }
  func.func @transform_1(%arg0: i32, %arg1: i32, %arg2: i32) -> (i32, i32, i32) {
    %c0_i32 = arith.constant 0 : i32
    %c0_i32_0 = arith.constant 0 : i32
    return %arg2, %c0_i32, %arg1 : i32, i32, i32
  }
  func.func @transform_2(%arg0: i32, %arg1: i32, %arg2: i32) -> (i32, i32) {
    %c0_i32 = arith.constant 0 : i32
    %c0_i32_0 = arith.constant 0 : i32
    return %c0_i32, %arg1 : i32, i32
  }
  func.func @transform_3(%arg0: i32, %arg1: i32, %arg2: i32) -> (i32, i32) {
    %c0_i32 = arith.constant 0 : i32
    return %arg0, %arg1 : i32, i32
  }
}

</mosaic_0001>

<bundles_post_ra>
// kernel: _body_impl.3
= control target key start
LH: loop header
LB: loop body
LE: loop exit
PB: predicated region body
PF: predicated region fallthrough
CT: control target
= control target key end

     0   :  { %s1175_s12 = smov 0   ;;  %s1177_s13 = smov 0   ;;  %s1330_s0 = inlined_call_operand.vmem [shape: bf16[16,8,8,32], index: 0, kind: input, shape index: {}]   ;;  %s1331_s1 = inlined_call_operand.vmem [shape: bf16[8,32,128], index: 1, kind: input, shape index: {}]   ;;  %s1332_s2 = inlined_call_operand.vmem [shape: f32[1,128], index: 2, kind: input, shape index: {}]   ;;  %s1333_s3 = inlined_call_operand.vmem [shape: bf16[128,128], index: 3, kind: output, shape index: {}]  }
   0x1   :  { %s1179_s14 = smov 0   ;;  %s1181_s15 = smov 0  }
   0x2   :  { %s1183_s16 = smov 0  }
   0x3 LB: > { %s25_s17 = sadd.s32 1, %s1148_s15  ;;  %p48_p1 = scmp.ne.s32.totalorder %s1140_s13, %s1136_s12  ;;  %s1152_s16 = sphi %s1183_s16, %s13_s16   ;;  %s1148_s15 = sphi %s1181_s15, %s1337_s15   ;;  %s1144_s14 = sphi %s1179_s14, %s1336_s14   ;;  %s1140_s13 = sphi %s1177_s13, %s1335_s13   ;;  %s1136_s12 = sphi %s1175_s12, %s1334_s12  }
   0x4   : > { %p26_p0 = scmp.ge.s32.totalorder %s25_s17, 8  ;;  %p49_p2 = scmp.eq.s32.totalorder %s1152_s16, 0 }
   0x5   : > { %s41_s19 = sadd.s32 1, %s1140_s13  ;;  %p902_p5 = scmp.ge.s32.totalorder %s1152_s16, 8 }
   0x6   : > { %s1339_s17 = smov (%p26_p0, %s25_s17), 0  ;;  %p50_p3 = por %p49_p2, %p48_p1 }
   0x7   : > { %s37_s18 = ssub.s32 %s1148_s15, %s1339_s17  ;;  %162 = sbr.rel (%p902_p5) target bundleno = 34 (0x22), region = 20 }
   0x8   : > { %p39_p4 = scmp.eq.s32.totalorder %s37_s18, 0 }
   0xa   : > { %s1210_s20 = scalar_select %p39_p4, %s1140_s13, %s41_s19  }
   0xe   : > { %165 = sbr.rel (!%p50_p3) target bundleno = 34 (0x22), region = 24  ;;  %s167_s21 = sand.u32 (%p50_p3), 1, %s1140_s13  }
   0xf   : > { %s904_s22 = sshll.u32 (%p50_p3), %s1148_s15, 2  ;;  %s903_s23 = sshll.u32 (%p50_p3), %s167_s21, 6 }
  0x10   : > { %s1218_s26 = scalar_lea.vmem (%p50_p3), %s1330_s0, %s904_s22  ;;  %s169_s27 = scalar_lea.vmem (%p50_p3), [#allocation4], %s903_s23 }
  0x11   : > { %v190_v0 = vld [vmem:[%s1218_s26] sm:$0xf] (%p50_p3) }
  0x12   : > { %v192_v1 = vld [vmem:[%s1218_s26 + $0x20] sm:$0xf] (%p50_p3)  ;;  %191 = vst [vmem:[%s169_s27] sm:$0xf] (%p50_p3), %v190_v0 }
  0x13   : > { %193 = vst [vmem:[%s169_s27 + $0x4] sm:$0xf] (%p50_p3), %v192_v1  ;;  %v194_v2 = vld [vmem:[%s1218_s26 + $0x40] sm:$0xf] (%p50_p3) }
  0x14   : > { %v196_v3 = vld [vmem:[%s1218_s26 + $0x60] sm:$0xf] (%p50_p3)  ;;  %195 = vst [vmem:[%s169_s27 + $0x8] sm:$0xf] (%p50_p3), %v194_v2 }
  0x15   : > { %v198_v4 = vld [vmem:[%s1218_s26 + $0x80] sm:$0xf]  ;;  %197 = vst [vmem:[%s169_s27 + $0xc] sm:$0xf] %v196_v3 }
  0x16   : > { %199 = vst [vmem:[%s169_s27 + $0x10] sm:$0xf] %v198_v4  ;;  %v200_v5 = vld [vmem:[%s1218_s26 + $0xa0] sm:$0xf] }
  0x17   : > { %v202_v6 = vld [vmem:[%s1218_s26 + $0xc0] sm:$0xf]  ;;  %201 = vst [vmem:[%s169_s27 + $0x14] sm:$0xf] %v200_v5 }
  0x18   : > { %v204_v7 = vld [vmem:[%s1218_s26 + $0xe0] sm:$0xf]  ;;  %203 = vst [vmem:[%s169_s27 + $0x18] sm:$0xf] %v202_v6 }
  0x19   : > { %205 = vst [vmem:[%s169_s27 + $0x1c] sm:$0xf] %v204_v7  ;;  %v206_v8 = vld [vmem:[%s1218_s26 + $0x100] sm:$0xf] }
  0x1a   : > { %v208_v9 = vld [vmem:[%s1218_s26 + $0x120] sm:$0xf]  ;;  %207 = vst [vmem:[%s169_s27 + $0x20] sm:$0xf] %v206_v8 }
  0x1b   : > { %v210_v10 = vld [vmem:[%s1218_s26 + $0x140] sm:$0xf]  ;;  %209 = vst [vmem:[%s169_s27 + $0x24] sm:$0xf] %v208_v9 }
  0x1c   : > { %211 = vst [vmem:[%s169_s27 + $0x28] sm:$0xf] %v210_v10  ;;  %v212_v11 = vld [vmem:[%s1218_s26 + $0x160] sm:$0xf] }
  0x1d   : > { %v214_v12 = vld [vmem:[%s1218_s26 + $0x180] sm:$0xf]  ;;  %213 = vst [vmem:[%s169_s27 + $0x2c] sm:$0xf] %v212_v11 }
  0x1e   : > { %v216_v13 = vld [vmem:[%s1218_s26 + $0x1a0] sm:$0xf]  ;;  %215 = vst [vmem:[%s169_s27 + $0x30] sm:$0xf] %v214_v12 }
  0x1f   : > { %217 = vst [vmem:[%s169_s27 + $0x34] sm:$0xf] %v216_v13  ;;  %v218_v14 = vld [vmem:[%s1218_s26 + $0x1c0] sm:$0xf] }
  0x20   : > { %v220_v15 = vld [vmem:[%s1218_s26 + $0x1e0] sm:$0xf]  ;;  %219 = vst [vmem:[%s169_s27 + $0x38] sm:$0xf] %v218_v14 }
  0x21   : > { %221 = vst [vmem:[%s169_s27 + $0x3c] sm:$0xf] %v220_v15 }
  0x22 PF: > { %p905_p6 = scmp.ge.s32.totalorder %s1152_s16, 1  ;;  %p286_p7 = scmp.lt.s32.totalorder %s1152_s16, 9 }
  0x24   : > { %p287_p8 = pnand %p905_p6, %p286_p7 }
  0x25   : > { %s293_s28 = sand.u32 (!%p287_p8), 1, %s1136_s12   ;;  %p331_p9 = scmp.lt.s32.totalorder (!%p287_p8), %s1144_s14, 7 }
  0x26   : > { %290 = sbr.rel (%p287_p8) target bundleno = 310 (0x136), region = 69  ;;  %s906_s29 = sshll.u32 (!%p287_p8), %s293_s28, 6 }
  0x27   : > { %s1244_s8 = scalar_lea.vmem (!%p287_p8), [#allocation4], %s906_s29  ;;  %p909_p10 = scmp.ne.s32.totalorder (!%p287_p8), %s1144_s14, 0 }
  0x2d   : > { %s332_s30 = scalar_select %p331_p9, %s1144_s14, 7 }
  0x2e   : > { %355 = sbr.rel (%p909_p10) target bundleno = 55 (0x37), region = 77  ;;  %v1154_v16 = vmov (!%p909_p10), 0.0  }
  0x2f   : > { %s965_s4 = sshll.u32 %s332_s30, 4  ;;  %356 = vst [vmem:[#allocation3] sm:$0xff] (!%p909_p10), %v1154_v16  ;;  %357 = vst [vmem:[#allocation3 + $0x8] sm:$0xff] (!%p909_p10), %v1154_v16 }
  0x30   : > { %s338_s7 = scalar_lea.vmem %s1331_s1, %s965_s4  ;;  %358 = vst [vmem:[#allocation3 + $0x10] sm:$0xff] (!%p909_p10), %v1154_v16  ;;  %359 = vst [vmem:[#allocation3 + $0x18] sm:$0xff] (!%p909_p10), %v1154_v16 }
  0x31   : > { %360 = vst [vmem:[#allocation3 + $0x20] sm:$0xff] (!%p909_p10), %v1154_v16  ;;  %361 = vst [vmem:[#allocation3 + $0x28] sm:$0xff] (!%p909_p10), %v1154_v16 }
  0x32   : > { %362 = vst [vmem:[#allocation3 + $0x30] sm:$0xff] (!%p909_p10), %v1154_v16  ;;  %363 = vst [vmem:[#allocation3 + $0x38] sm:$0xff] (!%p909_p10), %v1154_v16 }
  0x33   : > { %364 = vst [vmem:[#allocation3 + $0x40] sm:$0xff] (!%p909_p10), %v1154_v16  ;;  %365 = vst [vmem:[#allocation3 + $0x48] sm:$0xff] (!%p909_p10), %v1154_v16 }
  0x34   : > { %366 = vst [vmem:[#allocation3 + $0x50] sm:$0xff] (!%p909_p10), %v1154_v16  ;;  %367 = vst [vmem:[#allocation3 + $0x58] sm:$0xff] (!%p909_p10), %v1154_v16 }
  0x35   : > { %368 = vst [vmem:[#allocation3 + $0x60] sm:$0xff] %v1154_v16  ;;  %369 = vst [vmem:[#allocation3 + $0x68] sm:$0xff] %v1154_v16 }
  0x36   : > { %370 = vst [vmem:[#allocation3 + $0x70] sm:$0xff] %v1154_v16  ;;  %371 = vst [vmem:[#allocation3 + $0x78] sm:$0xff] %v1154_v16 }
  0x37 PF: > { %v1104_v17 = vld [vmem:[%s338_s7] sm:$0xff]   ;;  %vm373_vm0 = vcmask 257024   ;;  %v1105_v18 = vld [vmem:[%s338_s7 + $0x8] sm:$0xff]   ;;  %vm381_vm1 = vcmask 261124   ;;  %vm493_vm2 = vcmask 261120   ;;  %p943_p11 = scmp.ne.s32.totalorder %s1144_s14, 7 }
  0x38   : > { %1039 = vmatprep.subr.bf16.mxu0 %v1104_v17  ;;  %1059 = vmatprep.subr.bf16.mxu1 %v1104_v17  ;;  %v372_v19 = vld [vmem:[%s1244_s8] sm:$0xf]  ;;  %v1106_v20 = vld [vmem:[%s1244_s8 + $0x4] ss:$0 sps:$4 sm:$0xff]   ;;  %v912_v23 = vld [vmem:[%s1244_s8 + $0x8] sm:$0xf] }
  0x39   : > { %1040 = vmatpush3.bf16.msra.mxu0 %v1104_v17  ;;  %1061 = vmatpush3.bf16.msra.mxu1 %v1104_v17  ;;  %374 = vst.msk [vmem:[#allocation2] sm:$0xf] %vm373_vm0, %v372_v19  ;;  %v921_v21 = vld [vmem:[%s1244_s8 + $0x20] sm:$0xf]  ;;  %v1107_v22 = vld [vmem:[%s1244_s8 + $0x24] ss:$0 sps:$4 sm:$0xff]  }
  0x3a   : > { %1041 = vmatprep.subr.bf16.mxu0 %v1105_v18  ;;  %1060 = vmatprep.subr.bf16.mxu1 %v1105_v18  ;;  %382 = vst.msk [vmem:[#allocation2] sm:$0xf0] %vm381_vm1, %v1106_v20  ;;  %v1108_v24 = vld [vmem:[%s1244_s8 + $0xc] ss:$0 sps:$4 sm:$0xff]   ;;  %v924_v25 = vld [vmem:[%s1244_s8 + $0x28] sm:$0xf] }
  0x3b   : > { %415 = vst.msk [vmem:[#allocation2 + $0x20] sm:$0xf] %vm373_vm0, %v921_v21  ;;  %385 = vst.msk [vmem:[#allocation2 + $0x8] sm:$0xf] %vm373_vm0, %v912_v23  ;;  %v1109_v26 = vld [vmem:[%s1244_s8 + $0x2c] ss:$0 sps:$4 sm:$0xff]  }
  0x3c   : > { %422 = vst.msk [vmem:[#allocation2 + $0x20] sm:$0xf0] %vm381_vm1, %v1107_v22  ;;  %v915_v27 = vld [vmem:[%s1244_s8 + $0x10] sm:$0xf]  ;;  %392 = vst.msk [vmem:[#allocation2 + $0x8] sm:$0xf0] %vm381_vm1, %v1108_v24 }
  0x3d   : > { %425 = vst.msk [vmem:[#allocation2 + $0x28] sm:$0xf] %vm373_vm0, %v924_v25  ;;  %1042 = vmatpush3.bf16.msra.mxu0 %v1105_v18  ;;  %1062 = vmatpush3.bf16.msra.mxu1 %v1105_v18  ;;  %395 = vst.msk [vmem:[#allocation2 + $0x10] sm:$0xf] %vm373_vm0, %v915_v27  ;;  %v1110_v28 = vld [vmem:[%s1244_s8 + $0x14] ss:$0 sps:$4 sm:$0xff]  }
  0x3e   : > { %v927_v29 = vld [vmem:[%s1244_s8 + $0x30] sm:$0xf]  ;;  %432 = vst.msk [vmem:[#allocation2 + $0x28] sm:$0xf0] %vm381_vm1, %v1109_v26  ;;  %v1111_v30 = vld [vmem:[%s1244_s8 + $0x34] ss:$0 sps:$4 sm:$0xff]  }
  0x3f   : > { %435 = vst.msk [vmem:[#allocation2 + $0x30] sm:$0xf] %vm373_vm0, %v927_v29  ;;  %v918_v31 = vld [vmem:[%s1244_s8 + $0x18] sm:$0xf]  ;;  %v1112_v32 = vld [vmem:[%s1244_s8 + $0x1c] ss:$0 sps:$4 sm:$0xff]  }
  0x40   : > { %402 = vst.msk [vmem:[#allocation2 + $0x10] sm:$0xf0] %vm381_vm1, %v1110_v28  ;;  %v930_v33 = vld [vmem:[%s1244_s8 + $0x38] sm:$0xf]  ;;  %442 = vst.msk [vmem:[#allocation2 + $0x30] sm:$0xf0] %vm381_vm1, %v1111_v30 }
  0x41   : > { %405 = vst.msk [vmem:[#allocation2 + $0x18] sm:$0xf] %vm373_vm0, %v918_v31  ;;  %445 = vst.msk [vmem:[#allocation2 + $0x38] sm:$0xf] %vm373_vm0, %v930_v33  ;;  %v1113_v34 = vld [vmem:[%s1244_s8 + $0x3c] ss:$0 sps:$4 sm:$0xff]  }
  0x42   : > { %v469_v35 = vld [vmem:[#allocation2] sm:$0xff]  ;;  %412 = vst.msk [vmem:[#allocation2 + $0x18] sm:$0xf0] %vm381_vm1, %v1112_v32  ;;  %452 = vst.msk [vmem:[#allocation2 + $0x38] sm:$0xf0] %vm381_vm1, %v1113_v34  ;;  %v455_v43 = vld [vmem:[#allocation3 + $0x10] sm:$0xff] }
  0x43   : > { %1043 = vmatprep.mubr.msk.bf16.mxu0 %vm493_vm2, %v469_v35  ;;  %v473_v36 = vld [vmem:[#allocation2 + $0x20] sm:$0xff]  ;;  %v470_v37 = vld [vmem:[#allocation2 + $0x8] sm:$0xff]  ;;  %v463_v44 = vld [vmem:[#allocation3 + $0x50] sm:$0xff] }
  0x44   : > { %1051 = vmatprep.mubr.msk.bf16.mxu1 %vm493_vm2, %v473_v36  ;;  %1044 = vmatmul.mubr.msk.bf16.vlgmr.msra.gmra.mrb[0].mxu0 %vm493_vm2, %v470_v37  ;;  %v453_v45 = vld [vmem:[#allocation3] sm:$0xff]  ;;  %v456_v48 = vld [vmem:[#allocation3 + $0x18] sm:$0xff]  ;;  %v454_v53 = vld [vmem:[#allocation3 + $0x8] sm:$0xff] }
  0x45   : > { %v474_v38 = vld [vmem:[#allocation2 + $0x28] sm:$0xff]  ;;  %v461_v47 = vld [vmem:[#allocation3 + $0x40] sm:$0xff]  ;;  %v464_v52 = vld [vmem:[#allocation3 + $0x58] sm:$0xff] }
  0x46   : > { %1052 = vmatmul.mubr.msk.bf16.vlgmr.msra.gmra.mrb[0].mxu1 %vm493_vm2, %v474_v38  ;;  %v462_v58 = vld [vmem:[#allocation3 + $0x48] sm:$0xff]  ;;  %v459_v3 = vld [vmem:[#allocation3 + $0x30] sm:$0xff]  ;;  %v457_v5 = vld [vmem:[#allocation3 + $0x20] sm:$0xff] }
  0x47   : > { %v471_v39 = vld [vmem:[#allocation2 + $0x10] sm:$0xff]  ;;  %v465_v7 = vld [vmem:[#allocation3 + $0x60] sm:$0xff]  ;;  %v460_v8 = vld [vmem:[#allocation3 + $0x38] sm:$0xff] }
  0x48   : > { %1047 = vmatprep.mubr.msk.bf16.mxu0 %vm493_vm2, %v471_v39  ;;  %v475_v40 = vld [vmem:[#allocation2 + $0x30] sm:$0xff]  ;;  %v468_v12 = vld [vmem:[#allocation3 + $0x78] sm:$0xff]  ;;  %v458_v13 = vld [vmem:[#allocation3 + $0x28] sm:$0xff] }
  0x49   : > { %1055 = vmatprep.mubr.msk.bf16.mxu1 %vm493_vm2, %v475_v40  ;;  %v472_v41 = vld [vmem:[#allocation2 + $0x18] sm:$0xff]  ;;  %v467_v4 = vld [vmem:[#allocation3 + $0x70] sm:$0xff]  ;;  %v466_v18 = vld [vmem:[#allocation3 + $0x68] sm:$0xff] }
  0x4a   : > { %v476_v42 = vld [vmem:[#allocation2 + $0x38] sm:$0xff]  ;;  %v944_v29 = vld [vmem:[%s1332_s2] ss:$0 sm:$0xff] (!%p943_p11) }
  0x4c   : > { %1048 = vmatmul.mubr.msk.bf16.gmra.mrb[4].mxu0 %vm493_vm2, %v472_v41 }
  0x4e   : > { %1056 = vmatmul.mubr.msk.bf16.gmra.mrb[4].mxu1 %vm493_vm2, %v476_v42 }
 0x117   : > { %v1045_v46 = vpop.f32.mrb[0].mxu0 }
 0x118   : > { %v617_v49 = vadd.f32 %v1045_v46, %v455_v43  ;;  %v552_v51 = vpop.f32.mrb[1].mxu0 }
 0x119   : > { %v1053_v50 = vpop.f32.mrb[0].mxu1  ;;  %v615_v55 = vadd.f32 %v552_v51, %v453_v45  ;;  %v1046_v57 = vpop.f32.mrb[2].mxu0 }
 0x11a   : > { %v625_v54 = vadd.f32 %v1053_v50, %v463_v44  ;;  %v584_v56 = vpop.f32.mrb[1].mxu1  ;;  %633 = vst [vmem:[#allocation3 + $0x10] sm:$0xff] %v617_v49  ;;  %v618_v60 = vadd.f32 %v1046_v57, %v456_v48  ;;  %v555_v62 = vpop.f32.mrb[3].mxu0 }
 0x11b   : > { %v623_v59 = vadd.f32 %v584_v56, %v461_v47  ;;  %v1054_v61 = vpop.f32.mrb[2].mxu1  ;;  %631 = vst [vmem:[#allocation3] sm:$0xff] %v615_v55  ;;  %v616_v0 = vadd.f32 %v555_v62, %v454_v53 }
 0x11c   : > { %641 = vst [vmem:[#allocation3 + $0x50] sm:$0xff] %v625_v54  ;;  %v626_v63 = vadd.f32 %v1054_v61, %v464_v52  ;;  %v587_v1 = vpop.f32.mrb[3].mxu1  ;;  %634 = vst [vmem:[#allocation3 + $0x18] sm:$0xff] %v618_v60 }
 0x11d   : > { %639 = vst [vmem:[#allocation3 + $0x40] sm:$0xff] %v623_v59  ;;  %v624_v2 = vadd.f32 %v587_v1, %v462_v58  ;;  %632 = vst [vmem:[#allocation3 + $0x8] sm:$0xff] %v616_v0 }
 0x11e   : > { %642 = vst [vmem:[#allocation3 + $0x58] sm:$0xff] %v626_v63 }
 0x11f   : > { %640 = vst [vmem:[#allocation3 + $0x48] sm:$0xff] %v624_v2  ;;  %v1049_v6 = vpop.f32.mrb[4].mxu0 }
 0x120   : > { %v621_v9 = vadd.f32 %v1049_v6, %v459_v3  ;;  %v568_v11 = vpop.f32.mrb[5].mxu0 }
 0x121   : > { %v1057_v10 = vpop.f32.mrb[4].mxu1  ;;  %v619_v15 = vadd.f32 %v568_v11, %v457_v5  ;;  %v1050_v17 = vpop.f32.mrb[6].mxu0  ;;  %650 = sbr.rel (%p943_p11) target bundleno = 310 (0x136), region = 81  ;;  %v653_v32 = vld [vmem:[#allocation3 + $0x10] sm:$0xff] (!%p943_p11) }
 0x122   : > { %v629_v14 = vadd.f32 %v1057_v10, %v467_v4  ;;  %v600_v16 = vpop.f32.mrb[5].mxu1  ;;  %637 = vst [vmem:[#allocation3 + $0x30] sm:$0xff] %v621_v9  ;;  %v622_v20 = vadd.f32 %v1050_v17, %v460_v8  ;;  %v571_v22 = vpop.f32.mrb[7].mxu0  ;;  %v651_v27 = vld [vmem:[#allocation3] sm:$0xff] (!%p943_p11)  ;;  %v676_v35 = vadd.f32 (!%p943_p11), %v944_v29, %v653_v32 }
 0x123   : > { %v627_v19 = vadd.f32 %v600_v16, %v465_v7  ;;  %v1058_v21 = vpop.f32.mrb[6].mxu1  ;;  %635 = vst [vmem:[#allocation3 + $0x20] sm:$0xff] %v619_v15  ;;  %v620_v24 = vadd.f32 %v571_v22, %v458_v13  ;;  %v674_v30 = vadd.f32 (!%p943_p11), %v944_v29, %v651_v27  ;;  %v654_v33 = vld [vmem:[#allocation3 + $0x18] sm:$0xff] (!%p943_p11)  ;;  %v661_v47 = vld [vmem:[#allocation3 + $0x50] sm:$0xff] (!%p943_p11) }
 0x124   : > { %645 = vst [vmem:[#allocation3 + $0x70] sm:$0xff] %v629_v14  ;;  %v630_v23 = vadd.f32 %v1058_v21, %v468_v12  ;;  %v603_v25 = vpop.f32.mrb[7].mxu1  ;;  %638 = vst [vmem:[#allocation3 + $0x38] sm:$0xff] %v622_v20  ;;  %v652_v28 = vld [vmem:[#allocation3 + $0x8] sm:$0xff] (!%p943_p11)  ;;  %v677_v36 = vadd.f32 (!%p943_p11), %v944_v29, %v654_v33  ;;  %v659_v45 = vld [vmem:[#allocation3 + $0x40] sm:$0xff] (!%p943_p11)  ;;  %v692_v48 = vmax.f32 (!%p943_p11), %v676_v35, 0.0  ;;  %v684_v62 = vadd.f32 (!%p943_p11), %v944_v29, %v661_v47 }
 0x125   : > { %643 = vst [vmem:[#allocation3 + $0x60] sm:$0xff] %v627_v19  ;;  %v628_v26 = vadd.f32 %v603_v25, %v466_v18  ;;  %636 = vst [vmem:[#allocation3 + $0x28] sm:$0xff] %v620_v24  ;;  %v675_v31 = vadd.f32 (!%p943_p11), %v944_v29, %v652_v28  ;;  %v690_v41 = vmax.f32 (!%p943_p11), %v674_v30, 0.0  ;;  %v662_v52 = vld [vmem:[#allocation3 + $0x58] sm:$0xff] (!%p943_p11)  ;;  %v682_v57 = vadd.f32 (!%p943_p11), %v944_v29, %v659_v45 }
 0x126   : > { %646 = vst [vmem:[#allocation3 + $0x78] sm:$0xff] %v630_v23  ;;  %v660_v46 = vld [vmem:[#allocation3 + $0x48] sm:$0xff] (!%p943_p11)  ;;  %v693_v49 = vmax.f32 (!%p943_p11), %v677_v36, 0.0  ;;  %v685_v3 = vadd.f32 (!%p943_p11), %v944_v29, %v662_v52  ;;  %v700_v7 = vmax.f32 (!%p943_p11), %v684_v62, 0.0 }
 0x127   : > { %644 = vst [vmem:[#allocation3 + $0x68] sm:$0xff] %v628_v26  ;;  %v691_v42 = vmax.f32 (!%p943_p11), %v675_v31, 0.0  ;;  %v683_v61 = vadd.f32 (!%p943_p11), %v944_v29, %v660_v46  ;;  %v698_v2 = vmax.f32 (!%p943_p11), %v682_v57, 0.0 }
 0x128   : > { %v990_v59 = vpack.c.bf16 %v693_v49, %v692_v48  ;;  %v701_v9 = vmax.f32 %v685_v3, 0.0 }
 0x129   : > { %v657_v39 = vld [vmem:[#allocation3 + $0x30] sm:$0xff]  ;;  %v985_v54 = vpack.c.bf16 %v691_v42, %v690_v41  ;;  %v699_v6 = vmax.f32 %v683_v61, 0.0 }
 0x12a   : > { %v655_v34 = vld [vmem:[#allocation3 + $0x20] sm:$0xff]  ;;  %v680_v44 = vadd.f32 %v944_v29, %v657_v39  ;;  %1022 = vst [vmem:[%s1333_s3 + $0x8] sm:$0xff] %v990_v59   ;;  %v1010_v15 = vpack.c.bf16 %v701_v9, %v700_v7 }
 0x12b   : > { %v678_v38 = vadd.f32 %v944_v29, %v655_v34  ;;  %v658_v40 = vld [vmem:[#allocation3 + $0x38] sm:$0xff]  ;;  %v665_v63 = vld [vmem:[#allocation3 + $0x70] sm:$0xff]  ;;  %986 = vst [vmem:[%s1333_s3] sm:$0xff] %v985_v54   ;;  %v1005_v13 = vpack.c.bf16 %v699_v6, %v698_v2 }
 0x12c   : > { %v656_v37 = vld [vmem:[#allocation3 + $0x28] sm:$0xff]  ;;  %v681_v51 = vadd.f32 %v944_v29, %v658_v40  ;;  %v663_v53 = vld [vmem:[#allocation3 + $0x60] sm:$0xff]  ;;  %v696_v56 = vmax.f32 %v680_v44, 0.0  ;;  %v688_v11 = vadd.f32 %v944_v29, %v665_v63  ;;  %1026 = vst [vmem:[%s1333_s3 + $0x28] sm:$0xff] %v1010_v15  }
 0x12d   : > { %v679_v43 = vadd.f32 %v944_v29, %v656_v37  ;;  %v694_v50 = vmax.f32 %v678_v38, 0.0  ;;  %v666_v0 = vld [vmem:[#allocation3 + $0x78] sm:$0xff]  ;;  %v686_v4 = vadd.f32 %v944_v29, %v663_v53  ;;  %1025 = vst [vmem:[%s1333_s3 + $0x20] sm:$0xff] %v1005_v13  }
 0x12e   : > { %v664_v58 = vld [vmem:[#allocation3 + $0x68] sm:$0xff]  ;;  %v697_v60 = vmax.f32 %v681_v51, 0.0  ;;  %v689_v12 = vadd.f32 %v944_v29, %v666_v0  ;;  %v704_v16 = vmax.f32 %v688_v11, 0.0 }
 0x12f   : > { %v695_v55 = vmax.f32 %v679_v43, 0.0  ;;  %v687_v8 = vadd.f32 %v944_v29, %v664_v58  ;;  %v702_v10 = vmax.f32 %v686_v4, 0.0 }
 0x130   : > { %v1000_v5 = vpack.c.bf16 %v697_v60, %v696_v56  ;;  %v705_v17 = vmax.f32 %v689_v12, 0.0 }
 0x131   : > { %v995_v1 = vpack.c.bf16 %v695_v55, %v694_v50  ;;  %v703_v14 = vmax.f32 %v687_v8, 0.0 }
 0x132   : > { %1024 = vst [vmem:[%s1333_s3 + $0x18] sm:$0xff] %v1000_v5   ;;  %v1020_v19 = vpack.c.bf16 %v705_v17, %v704_v16 }
 0x133   : > { %1023 = vst [vmem:[%s1333_s3 + $0x10] sm:$0xff] %v995_v1   ;;  %v1015_v18 = vpack.c.bf16 %v703_v14, %v702_v10 }
 0x134   : > { %1028 = vst [vmem:[%s1333_s3 + $0x38] sm:$0xff] %v1020_v19  }
 0x135   : > { %1027 = vst [vmem:[%s1333_s3 + $0x30] sm:$0xff] %v1015_v18  }
 0x136 PF: > { %s13_s16 = sadd.s32 1, %s1152_s16   ;;  %s1334_s12 = smov %s1140_s13 }
 0x137   : > { %p10_p12 = scmp.ge.s32.totalorder %s13_s16, 10   ;;  %s1335_s13 = smov %s1210_s20 }
 0x138   : > { %s1336_s14 = smov %s1148_s15  ;;  %s1337_s15 = smov %s1339_s17 }
 0x139   :  { %12 = sbr.rel (!%p10_p12) target bundleno = 3 (0x3), region = 137 }

// kernel: _body_impl.4
= control target key start
LH: loop header
LB: loop body
LE: loop exit
PB: predicated region body
PF: predicated region fallthrough
CT: control target
= control target key end

     0   :  { %s1196_s12 = smov 0   ;;  %s1198_s13 = smov 0   ;;  %s1328_s0 = inlined_call_operand.vmem [shape: bf16[8,2,4,256], index: 0, kind: input, shape index: {}]   ;;  %s1329_s1 = inlined_call_operand.vmem [shape: bf16[2,256,256], index: 1, kind: input, shape index: {}]   ;;  %s1330_s2 = inlined_call_operand.vmem [shape: f32[1,256], index: 2, kind: input, shape index: {}]   ;;  %s1331_s3 = inlined_call_operand.vmem [shape: bf16[32,256], index: 3, kind: output, shape index: {}]  }
   0x1   :  { %s1200_s14 = smov 0   ;;  %s1202_s15 = smov 0  }
   0x2   :  { %s1204_s16 = smov 0  }
   0x3 LB: > { %s25_s17 = sadd.s32 1, %s1168_s15  ;;  %p48_p1 = scmp.ne.s32.totalorder %s1160_s13, %s1156_s12  ;;  %s1172_s16 = sphi %s1204_s16, %s13_s16   ;;  %s1168_s15 = sphi %s1202_s15, %s1335_s15   ;;  %s1164_s14 = sphi %s1200_s14, %s1334_s14   ;;  %s1160_s13 = sphi %s1198_s13, %s1333_s13   ;;  %s1156_s12 = sphi %s1196_s12, %s1332_s12  }
   0x4   : > { %p26_p0 = scmp.ge.s32.totalorder %s25_s17, 2  ;;  %p49_p2 = scmp.eq.s32.totalorder %s1172_s16, 0 }
   0x5   : > { %s41_s19 = sadd.s32 1, %s1160_s13  ;;  %p937_p5 = scmp.ge.s32.totalorder %s1172_s16, 2 }
   0x6   : > { %s1337_s17 = smov (%p26_p0, %s25_s17), 0  ;;  %p50_p3 = por %p49_p2, %p48_p1 }
   0x7   : > { %s37_s18 = ssub.s32 %s1168_s15, %s1337_s17  ;;  %164 = sbr.rel (%p937_p5) target bundleno = 23 (0x17), region = 20 }
   0x8   : > { %p39_p4 = scmp.eq.s32.totalorder %s37_s18, 0 }
   0xa   : > { %s1231_s20 = scalar_select %p39_p4, %s1160_s13, %s41_s19  }
   0xe   : > { %167 = sbr.rel (!%p50_p3) target bundleno = 23 (0x17), region = 24  ;;  %s169_s21 = sand.u32 (%p50_p3), 1, %s1160_s13  }
   0xf   : > { %s1002_s22 = sshll.u32 (%p50_p3), %s1168_s15, 2  ;;  %s938_s23 = sshll.u32 (%p50_p3), %s169_s21, 5 }
  0x10   : > { %s177_s26 = scalar_lea.vmem (%p50_p3), %s1328_s0, %s1002_s22  ;;  %s171_s27 = scalar_lea.vmem (%p50_p3), [#allocation4], %s938_s23 }
  0x11   : > { %v193_v0 = vld [vmem:[%s177_s26] sm:$0xf] (%p50_p3)  ;;  %v195_v1 = vld [vmem:[%s177_s26 + $0x8] sm:$0xf] (%p50_p3)  ;;  %v197_v2 = vld [vmem:[%s177_s26 + $0x10] sm:$0xf] (%p50_p3) }
  0x12   : > { %194 = vst [vmem:[%s171_s27] sm:$0xf] (%p50_p3), %v193_v0  ;;  %196 = vst [vmem:[%s171_s27 + $0x4] sm:$0xf] (%p50_p3), %v195_v1  ;;  %v199_v3 = vld [vmem:[%s177_s26 + $0x18] sm:$0xf] (%p50_p3) }
  0x13   : > { %v201_v4 = vld [vmem:[%s177_s26 + $0x20] sm:$0xf] (%p50_p3)  ;;  %198 = vst [vmem:[%s171_s27 + $0x8] sm:$0xf] (%p50_p3), %v197_v2  ;;  %200 = vst [vmem:[%s171_s27 + $0xc] sm:$0xf] (%p50_p3), %v199_v3 }
  0x14   : > { %202 = vst [vmem:[%s171_s27 + $0x10] sm:$0xf] (%p50_p3), %v201_v4  ;;  %v203_v5 = vld [vmem:[%s177_s26 + $0x28] sm:$0xf] (%p50_p3)  ;;  %v205_v6 = vld [vmem:[%s177_s26 + $0x30] sm:$0xf] (%p50_p3) }
  0x15   : > { %v207_v7 = vld [vmem:[%s177_s26 + $0x38] sm:$0xf]  ;;  %204 = vst [vmem:[%s171_s27 + $0x14] sm:$0xf] %v203_v5  ;;  %206 = vst [vmem:[%s171_s27 + $0x18] sm:$0xf] %v205_v6 }
  0x16   : > { %208 = vst [vmem:[%s171_s27 + $0x1c] sm:$0xf] %v207_v7 }
  0x17 PF: > { %p941_p6 = scmp.ge.s32.totalorder %s1172_s16, 1  ;;  %p259_p7 = scmp.lt.s32.totalorder %s1172_s16, 3 }
  0x19   : > { %p260_p8 = pnand %p941_p6, %p259_p7 }
  0x1a   : > { %s266_s28 = sand.u32 (!%p260_p8), 1, %s1156_s12   ;;  %p309_p9 = scmp.lt.s32.totalorder (!%p260_p8), %s1164_s14, 1 }
  0x1b   : > { %263 = sbr.rel (%p260_p8) target bundleno = 340 (0x154), region = 69  ;;  %s942_s29 = sshll.u32 (!%p260_p8), %s266_s28, 5 }
  0x1c   : > { %s1249_s8 = scalar_lea.vmem (!%p260_p8), [#allocation4], %s942_s29  ;;  %p945_p10 = scmp.ne.s32.totalorder (!%p260_p8), %s1164_s14, 0 }
  0x22   : > { %s310_s30 = scalar_select %p309_p9, %s1164_s14, 1 }
  0x23   : > { %338 = sbr.rel (%p945_p10) target bundleno = 42 (0x2a), region = 77  ;;  %v1174_v8 = vmov (!%p945_p10), 0.0  }
  0x24   : > { %s1003_s4 = sshll.u32 %s310_s30, 8  ;;  %339 = vst [vmem:[#allocation3] sm:$0xff] (!%p945_p10), %v1174_v8  ;;  %340 = vst [vmem:[#allocation3 + $0x8] sm:$0xff] (!%p945_p10), %v1174_v8 }
  0x25   : > { %s1247_s7 = scalar_lea.vmem %s1329_s1, %s1003_s4  ;;  %341 = vst [vmem:[#allocation3 + $0x10] sm:$0xff] (!%p945_p10), %v1174_v8  ;;  %342 = vst [vmem:[#allocation3 + $0x18] sm:$0xff] (!%p945_p10), %v1174_v8 }
  0x26   : > { %343 = vst [vmem:[#allocation3 + $0x20] sm:$0xff] (!%p945_p10), %v1174_v8  ;;  %344 = vst [vmem:[#allocation3 + $0x28] sm:$0xff] (!%p945_p10), %v1174_v8 }
  0x27   : > { %345 = vst [vmem:[#allocation3 + $0x30] sm:$0xff] (!%p945_p10), %v1174_v8  ;;  %346 = vst [vmem:[#allocation3 + $0x38] sm:$0xff] (!%p945_p10), %v1174_v8 }
  0x2a PF: > { %v1082_v9 = vld [vmem:[%s1247_s7 + $0x4] ss:$8 sps:$4 sm:$0xff]   ;;  %v1084_v10 = vld [vmem:[%s1247_s7] ss:$8 sps:$4 sm:$0xff]   ;;  %v1085_v11 = vld [vmem:[%s1247_s7 + $0x14] ss:$8 sps:$4 sm:$0xff]   ;;  %v368_v20 = vlaneseq }
  0x2b   : > { %674 = vmatprep.subr.bf16.mxu0 %v1082_v9  ;;  %1008 = vmatprep.subr.bf16.mxu1 %v1082_v9  ;;  %v1087_v12 = vld [vmem:[%s1247_s7 + $0x10] ss:$8 sps:$4 sm:$0xff]   ;;  %v1088_v13 = vld [vmem:[%s1247_s7 + $0x24] ss:$8 sps:$4 sm:$0xff]   ;;  %v1090_v14 = vld [vmem:[%s1247_s7 + $0x20] ss:$8 sps:$4 sm:$0xff]  }
  0x2c   : > { %675 = vmatpush1.bf16.msra.mxu0 %v1084_v10  ;;  %1024 = vmatpush1.bf16.msra.mxu1 %v1084_v10  ;;  %v1091_v15 = vld [vmem:[%s1247_s7 + $0x34] ss:$8 sps:$4 sm:$0xff]   ;;  %v1093_v16 = vld [vmem:[%s1247_s7 + $0x30] ss:$8 sps:$4 sm:$0xff]   ;;  %v1094_v17 = vld [vmem:[%s1247_s7 + $0x44] ss:$8 sps:$4 sm:$0xff]  }
  0x2d   : > { %676 = vmatprep.subr.bf16.mxu0 %v1085_v11  ;;  %1009 = vmatprep.subr.bf16.mxu1 %v1085_v11  ;;  %v1175_v18 = vmov 1983009808   ;;  %v1096_v21 = vld [vmem:[%s1247_s7 + $0x40] ss:$8 sps:$4 sm:$0xff]   ;;  %v1097_v22 = vld [vmem:[%s1247_s7 + $0x54] ss:$8 sps:$4 sm:$0xff]  }
  0x2e   : > { %v366_v19 = vunpack.c.l.s4 %v1175_v18  ;;  %v1263_v24 = vshrl.u32 %v368_v20, 7  ;;  %v1099_v25 = vld [vmem:[%s1247_s7 + $0x50] ss:$8 sps:$4 sm:$0xff]   ;;  %v1100_v26 = vld [vmem:[%s1247_s7 + $0x64] ss:$8 sps:$4 sm:$0xff]   ;;  %p993_p11 = scmp.ne.s32.totalorder %s1164_s14, 1 }
  0x2f   : > { %v1102_v28 = vld [vmem:[%s1247_s7 + $0x60] ss:$8 sps:$4 sm:$0xff]   ;;  %v1103_v30 = vld [vmem:[%s1247_s7 + $0x74] ss:$8 sps:$4 sm:$0xff]   ;;  %v1130_v32 = vld [vmem:[%s1249_s8 + $0x4] ss:$0 sps:$4 sm:$0xff]  }
  0x30   : > { %677 = vmatpush1.bf16.msra.mxu0 %v1087_v12  ;;  %1025 = vmatpush1.bf16.msra.mxu1 %v1087_v12  ;;  %v367_v23 = vunpack.c.0.s8 %v366_v19  ;;  %v946_v29 = vld.sshfl [vmem:[%s1249_s8] sm:$0x33 pattern:$0x76325410]  ;;  %v1131_v34 = vld [vmem:[%s1249_s8 + $0xc] ss:$0 sps:$4 sm:$0xff]  }
  0x31   : > { %678 = vmatprep.subr.bf16.mxu0 %v1088_v13  ;;  %1010 = vmatprep.subr.bf16.mxu1 %v1088_v13  ;;  %v356_v31 = vcombine.high %v946_v29, %v946_v29  ;;  %359 = vst [vmem:[#allocation2] sm:$0x3] %v946_v29  ;;  %v950_v33 = vld.sshfl [vmem:[%s1249_s8 + $0x8] sm:$0x33 pattern:$0x76325410] }
  0x32   : > { %v370_v27 = vsub.s32 %v367_v23, %v1263_v24  ;;  %v387_v36 = vcombine.low %v950_v33, %v950_v33  ;;  %391 = vst [vmem:[#allocation2 + $0x8] sm:$0x30] %v950_v33  ;;  %948 = vst.sshfl [vmem:[#allocation2] sm:$0x30 pattern:$0x76325410] %v1130_v32 }
  0x33   : > { %360 = vst [vmem:[#allocation2 + $0x8] sm:$0x3] %v356_v31  ;;  %v954_v37 = vld.sshfl [vmem:[%s1249_s8 + $0x10] sm:$0x33 pattern:$0x76325410] }
  0x34   : > { %679 = vmatpush1.bf16.msra.mxu0 %v1090_v14  ;;  %1026 = vmatpush1.bf16.msra.mxu1 %v1090_v14  ;;  %v371_v35 = vrot.slane %v1130_v32, %v370_v27  ;;  %952 = vst.sshfl [vmem:[#allocation2 + $0x8] sm:$0xc0 pattern:$0x76325410] %v1131_v34  ;;  %v418_v38 = vcombine.high %v954_v37, %v954_v37  ;;  %v1132_v39 = vld [vmem:[%s1249_s8 + $0x14] ss:$0 sps:$4 sm:$0xff]  }
  0x35   : > { %680 = vmatprep.subr.bf16.mxu0 %v1091_v15  ;;  %1011 = vmatprep.subr.bf16.mxu1 %v1091_v15  ;;  %v958_v40 = vld.sshfl [vmem:[%s1249_s8 + $0x18] sm:$0x33 pattern:$0x76325410]  ;;  %421 = vst [vmem:[#allocation2 + $0x10] sm:$0x3] %v954_v37  ;;  %v402_v41 = vrot.slane %v1131_v34, %v370_v27  ;;  %v433_v46 = vrot.slane %v1132_v39, %v370_v27 }
  0x36   : > { %v372_v42 = vcombine.high %v371_v35, %v371_v35  ;;  %390 = vst [vmem:[#allocation2] sm:$0x30] %v387_v36  ;;  %v449_v43 = vcombine.low %v958_v40, %v958_v40  ;;  %453 = vst [vmem:[#allocation2 + $0x18] sm:$0x30] %v958_v40  ;;  %v1133_v44 = vld [vmem:[%s1249_s8 + $0x1c] ss:$0 sps:$4 sm:$0xff]  }
  0x37   : > { %v1105_v45 = vld [vmem:[%s1247_s7 + $0x70] ss:$8 sps:$4 sm:$0xff]   ;;  %422 = vst [vmem:[#allocation2 + $0x18] sm:$0x3] %v418_v38  ;;  %v403_v47 = vcombine.low %v402_v41, %v402_v41  ;;  %v1106_v48 = vld [vmem:[%s1247_s7 + $0x84] ss:$8 sps:$4 sm:$0xff]   ;;  %v464_v49 = vrot.slane %v1133_v44, %v370_v27  ;;  %v434_v50 = vcombine.high %v433_v46, %v433_v46 }
  0x38   : > { %681 = vmatpush1.bf16.msra.mxu0 %v1093_v16  ;;  %1027 = vmatpush1.bf16.msra.mxu1 %v1093_v16  ;;  %956 = vst.sshfl [vmem:[#allocation2 + $0x10] sm:$0x30 pattern:$0x76325410] %v1132_v39  ;;  %376 = vst [vmem:[#allocation2 + $0x8] sm:$0xc] %v372_v42 }
  0x39   : > { %682 = vmatprep.subr.bf16.mxu0 %v1094_v17  ;;  %1012 = vmatprep.subr.bf16.mxu1 %v1094_v17  ;;  %960 = vst.sshfl [vmem:[#allocation2 + $0x18] sm:$0xc0 pattern:$0x76325410] %v1133_v44  ;;  %452 = vst [vmem:[#allocation2 + $0x10] sm:$0x30] %v449_v43  ;;  %v465_v51 = vcombine.low %v464_v49, %v464_v49 }
  0x3a   : > { %406 = vst [vmem:[#allocation2] sm:$0xc0] %v403_v47  ;;  %v1108_v52 = vld [vmem:[%s1247_s7 + $0x80] ss:$8 sps:$4 sm:$0xff]   ;;  %438 = vst [vmem:[#allocation2 + $0x18] sm:$0xc] %v434_v50 }
  0x3b   : > { %v1109_v53 = vld [vmem:[%s1247_s7 + $0x94] ss:$8 sps:$4 sm:$0xff]   ;;  %468 = vst [vmem:[#allocation2 + $0x10] sm:$0xc0] %v465_v51  ;;  %v1111_v54 = vld [vmem:[%s1247_s7 + $0x90] ss:$8 sps:$4 sm:$0xff]  }
  0x3c   : > { %683 = vmatpush1.bf16.msra.mxu0 %v1096_v21  ;;  %1028 = vmatpush1.bf16.msra.mxu1 %v1096_v21  ;;  %v1112_v56 = vld [vmem:[%s1247_s7 + $0xa4] ss:$8 sps:$4 sm:$0xff]   ;;  %v1114_v58 = vld [vmem:[%s1247_s7 + $0xa0] ss:$8 sps:$4 sm:$0xff]   ;;  %v1115_v59 = vld [vmem:[%s1247_s7 + $0xb4] ss:$8 sps:$4 sm:$0xff]  }
  0x3d   : > { %684 = vmatprep.subr.bf16.mxu0 %v1097_v22  ;;  %1013 = vmatprep.subr.bf16.mxu1 %v1097_v22  ;;  %v1117_v60 = vld [vmem:[%s1247_s7 + $0xb0] ss:$8 sps:$4 sm:$0xff]   ;;  %v1118_v61 = vld [vmem:[%s1247_s7 + $0xc4] ss:$8 sps:$4 sm:$0xff]   ;;  %v1120_v62 = vld [vmem:[%s1247_s7 + $0xc0] ss:$8 sps:$4 sm:$0xff]  }
  0x3e   : > { %v1121_v63 = vld [vmem:[%s1247_s7 + $0xd4] ss:$8 sps:$4 sm:$0xff]   ;;  %v1123_v0 = vld [vmem:[%s1247_s7 + $0xd0] ss:$8 sps:$4 sm:$0xff]   ;;  %v1124_v1 = vld [vmem:[%s1247_s7 + $0xe4] ss:$8 sps:$4 sm:$0xff]  }
  0x3f   : > { %v479_v55 = vld [vmem:[#allocation2 + $0x8] sm:$0xff]  ;;  %v1127_v3 = vld [vmem:[%s1247_s7 + $0xf4] ss:$8 sps:$4 sm:$0xff]   ;;  %v1129_v4 = vld [vmem:[%s1247_s7 + $0xf0] ss:$8 sps:$4 sm:$0xff]   ;;  %v759_v35 = vsub.s32 (!%p993_p11), 0, %v1263_v24 }
  0x40   : > { %685 = vmatpush1.bf16.msra.mxu0 %v1099_v25  ;;  %1029 = vmatpush1.bf16.msra.mxu1 %v1099_v25  ;;  %v1126_v2 = vld [vmem:[%s1247_s7 + $0xe0] ss:$8 sps:$4 sm:$0xff]   ;;  %v472_v13 = vld [vmem:[#allocation3 + $0x10] sm:$0xff]  ;;  %v473_v19 = vld [vmem:[#allocation3 + $0x18] sm:$0xff]  ;;  %v763_v36 = vsub.s32 (!%p993_p11), 1, %v1263_v24 }
  0x41   : > { %686 = vmatprep.subr.bf16.mxu0 %v1100_v26  ;;  %1014 = vmatprep.subr.bf16.mxu1 %v1100_v26  ;;  %v481_v57 = vld [vmem:[#allocation2 + $0x18] sm:$0xff]  ;;  %v478_v5 = vld [vmem:[#allocation2] sm:$0xff]  ;;  %v471_v9 = vld [vmem:[#allocation3 + $0x8] sm:$0xff] }
  0x42   : > { %706 = vmatprep.mubr.bf16.mxu0 %v479_v55  ;;  %716 = vmatprep.mubr.bf16.mxu1 %v481_v57  ;;  %v480_v6 = vld [vmem:[#allocation2 + $0x10] sm:$0xff]  ;;  %v470_v7 = vld [vmem:[#allocation3] sm:$0xff]  ;;  %v475_v10 = vld [vmem:[#allocation3 + $0x28] sm:$0xff] }
  0x43   : > { %v474_v8 = vld [vmem:[#allocation3 + $0x20] sm:$0xff]  ;;  %v476_v14 = vld [vmem:[#allocation3 + $0x30] sm:$0xff]  ;;  %v477_v20 = vld [vmem:[#allocation3 + $0x38] sm:$0xff] }
  0x44   : > { %687 = vmatpush1.bf16.msra.mxu0 %v1102_v28  ;;  %1030 = vmatpush1.bf16.msra.mxu1 %v1102_v28  ;;  %v755_v34 = vld [vmem:[%s1330_s2] sm:$0x3] (!%p993_p11) }
  0x45   : > { %688 = vmatprep.subr.bf16.mxu0 %v1103_v30  ;;  %1015 = vmatprep.subr.bf16.mxu1 %v1103_v30  ;;  %v760_v40 = vrot.slane (!%p993_p11), %v755_v34, %v759_v35  ;;  %v764_v41 = vrot.slane (!%p993_p11), %v755_v34, %v763_v36 }
  0x48   : > { %689 = vmatpush1.bf16.msra.mxu0 %v1105_v45  ;;  %1031 = vmatpush1.bf16.msra.mxu1 %v1105_v45 }
  0x49   : > { %690 = vmatprep.subr.bf16.mxu0 %v1106_v48  ;;  %1016 = vmatprep.subr.bf16.mxu1 %v1106_v48 }
  0x4c   : > { %691 = vmatpush1.bf16.msra.mxu0 %v1108_v52  ;;  %1032 = vmatpush1.bf16.msra.mxu1 %v1108_v52 }
  0x4d   : > { %692 = vmatprep.subr.bf16.mxu0 %v1109_v53  ;;  %1017 = vmatprep.subr.bf16.mxu1 %v1109_v53 }
  0x50   : > { %693 = vmatpush1.bf16.msra.mxu0 %v1111_v54  ;;  %1033 = vmatpush1.bf16.msra.mxu1 %v1111_v54 }
  0x51   : > { %694 = vmatprep.subr.bf16.mxu0 %v1112_v56  ;;  %1018 = vmatprep.subr.bf16.mxu1 %v1112_v56 }
  0x54   : > { %695 = vmatpush1.bf16.msra.mxu0 %v1114_v58  ;;  %1034 = vmatpush1.bf16.msra.mxu1 %v1114_v58 }
  0x55   : > { %696 = vmatprep.subr.bf16.mxu0 %v1115_v59  ;;  %1019 = vmatprep.subr.bf16.mxu1 %v1115_v59 }
  0x58   : > { %697 = vmatpush1.bf16.msra.mxu0 %v1117_v60  ;;  %1035 = vmatpush1.bf16.msra.mxu1 %v1117_v60 }
  0x59   : > { %698 = vmatprep.subr.bf16.mxu0 %v1118_v61  ;;  %1020 = vmatprep.subr.bf16.mxu1 %v1118_v61 }
  0x5c   : > { %699 = vmatpush1.bf16.msra.mxu0 %v1120_v62  ;;  %1036 = vmatpush1.bf16.msra.mxu1 %v1120_v62 }
  0x5d   : > { %700 = vmatprep.subr.bf16.mxu0 %v1121_v63  ;;  %1021 = vmatprep.subr.bf16.mxu1 %v1121_v63 }
  0x60   : > { %701 = vmatpush1.bf16.msra.mxu0 %v1123_v0  ;;  %1037 = vmatpush1.bf16.msra.mxu1 %v1123_v0 }
  0x61   : > { %702 = vmatprep.subr.bf16.mxu0 %v1124_v1  ;;  %1022 = vmatprep.subr.bf16.mxu1 %v1124_v1 }
  0x64   : > { %703 = vmatpush1.bf16.msra.mxu0 %v1126_v2  ;;  %1038 = vmatpush1.bf16.msra.mxu1 %v1126_v2 }
  0x65   : > { %704 = vmatprep.subr.bf16.mxu0 %v1127_v3  ;;  %1023 = vmatprep.subr.bf16.mxu1 %v1127_v3 }
  0x68   : > { %705 = vmatpush1.bf16.msra.mxu0 %v1129_v4  ;;  %1039 = vmatpush1.bf16.msra.mxu1 %v1129_v4 }
  0x6b   : > { %707 = vmatmul.mubr.bf16.vlgmr.msra.gmra.mrb[0].mxu0 %v478_v5  ;;  %717 = vmatmul.mubr.bf16.vlgmr.msra.gmra.mrb[0].mxu1 %v480_v6 }
 0x13e   : > { %v708_v11 = vpop.f32.mrb[0].mxu0  ;;  %v718_v12 = vpop.f32.mrb[0].mxu1  ;;  %746 = sbr.rel (%p993_p11) target bundleno = 340 (0x154), region = 81 }
 0x13f   : > { %v727_v15 = vadd.f32 %v708_v11, %v470_v7  ;;  %v731_v16 = vadd.f32 %v718_v12, %v474_v8  ;;  %v710_v17 = vpop.f32.mrb[1].mxu0  ;;  %v720_v18 = vpop.f32.mrb[1].mxu1 }
 0x140   : > { %v728_v21 = vadd.f32 %v710_v17, %v471_v9  ;;  %v732_v22 = vadd.f32 %v720_v18, %v475_v10  ;;  %v712_v23 = vpop.f32.mrb[2].mxu0  ;;  %v722_v25 = vpop.f32.mrb[2].mxu1 }
 0x141   : > { %735 = vst [vmem:[#allocation3] sm:$0xff] %v727_v15  ;;  %739 = vst [vmem:[#allocation3 + $0x20] sm:$0xff] %v731_v16  ;;  %v729_v26 = vadd.f32 %v712_v23, %v472_v13  ;;  %v733_v27 = vadd.f32 %v722_v25, %v476_v14  ;;  %v714_v28 = vpop.f32.mrb[3].mxu0  ;;  %v724_v29 = vpop.f32.mrb[3].mxu1 }
 0x142   : > { %736 = vst [vmem:[#allocation3 + $0x8] sm:$0xff] %v728_v21  ;;  %740 = vst [vmem:[#allocation3 + $0x28] sm:$0xff] %v732_v22  ;;  %v730_v30 = vadd.f32 %v714_v28, %v473_v19  ;;  %v734_v31 = vadd.f32 %v724_v29, %v477_v20 }
 0x143   : > { %737 = vst [vmem:[#allocation3 + $0x10] sm:$0xff] %v729_v26  ;;  %741 = vst [vmem:[#allocation3 + $0x30] sm:$0xff] %v733_v27 }
 0x144   : > { %738 = vst [vmem:[#allocation3 + $0x18] sm:$0xff] %v730_v30  ;;  %742 = vst [vmem:[#allocation3 + $0x38] sm:$0xff] %v734_v31 }
 0x148   : > { %v747_v32 = vld [vmem:[#allocation3] sm:$0xff] }
 0x149   : > { %v748_v33 = vld [vmem:[#allocation3 + $0x8] sm:$0xff]  ;;  %v751_v39 = vld [vmem:[#allocation3 + $0x20] sm:$0xff]  ;;  %v767_v45 = vadd.f32 %v760_v40, %v747_v32 }
 0x14a   : > { %v749_v37 = vld [vmem:[#allocation3 + $0x10] sm:$0xff]  ;;  %v752_v42 = vld [vmem:[#allocation3 + $0x28] sm:$0xff]  ;;  %v768_v46 = vadd.f32 %v764_v41, %v748_v33  ;;  %v771_v49 = vadd.f32 %v760_v40, %v751_v39 }
 0x14b   : > { %v750_v38 = vld [vmem:[#allocation3 + $0x18] sm:$0xff]  ;;  %v753_v43 = vld [vmem:[#allocation3 + $0x30] sm:$0xff]  ;;  %v769_v47 = vadd.f32 %v760_v40, %v749_v37  ;;  %v772_v50 = vadd.f32 %v764_v41, %v752_v42  ;;  %v775_v53 = vmax.f32 %v767_v45, 0.0 }
 0x14c   : > { %v754_v44 = vld [vmem:[#allocation3 + $0x38] sm:$0xff]  ;;  %v770_v48 = vadd.f32 %v764_v41, %v750_v38  ;;  %v773_v51 = vadd.f32 %v760_v40, %v753_v43  ;;  %v776_v54 = vmax.f32 %v768_v46, 0.0  ;;  %v779_v56 = vmax.f32 %v771_v49, 0.0 }
 0x14d   : > { %v774_v52 = vadd.f32 %v764_v41, %v754_v44  ;;  %v777_v55 = vmax.f32 %v769_v47, 0.0  ;;  %v780_v57 = vmax.f32 %v772_v50, 0.0 }
 0x14e   : > { %v778_v24 = vmax.f32 %v770_v48, 0.0  ;;  %v781_v58 = vmax.f32 %v773_v51, 0.0  ;;  %v1004_v60 = vpack.c.bf16 %v776_v54, %v775_v53 }
 0x14f   : > { %v782_v59 = vmax.f32 %v774_v52, 0.0  ;;  %v1006_v62 = vpack.c.bf16 %v780_v57, %v779_v56 }
 0x150   : > { %v1005_v61 = vpack.c.bf16 %v778_v24, %v777_v55  ;;  %807 = vst [vmem:[%s1331_s3] sm:$0xff] %v1004_v60 }
 0x151   : > { %v1007_v63 = vpack.c.bf16 %v782_v59, %v781_v58  ;;  %809 = vst [vmem:[%s1331_s3 + $0x10] sm:$0xff] %v1006_v62 }
 0x152   : > { %808 = vst [vmem:[%s1331_s3 + $0x8] sm:$0xff] %v1005_v61 }
 0x153   : > { %810 = vst [vmem:[%s1331_s3 + $0x18] sm:$0xff] %v1007_v63 }
 0x154 PF: > { %s13_s16 = sadd.s32 1, %s1172_s16   ;;  %s1332_s12 = smov %s1160_s13 }
 0x155   : > { %p10_p12 = scmp.ge.s32.totalorder %s13_s16, 4   ;;  %s1333_s13 = smov %s1231_s20 }
 0x156   : > { %s1334_s14 = smov %s1168_s15  ;;  %s1335_s15 = smov %s1337_s17 }
 0x157   :  { %12 = sbr.rel (!%p10_p12) target bundleno = 3 (0x3), region = 129 }

// kernel: _body_impl.5
= control target key start
LH: loop header
LB: loop body
LE: loop exit
PB: predicated region body
PF: predicated region fallthrough
CT: control target
= control target key end

     0   :  { %s2043_s12 = smov 0   ;;  %s2045_s13 = smov 0   ;;  %s2271_s0 = inlined_call_operand.vmem [shape: bf16[4,2,2,512], index: 0, kind: input, shape index: {}]   ;;  %s2272_s1 = inlined_call_operand.vmem [shape: bf16[2,512,512], index: 1, kind: input, shape index: {}]   ;;  %s2273_s2 = inlined_call_operand.vmem [shape: f32[1,512], index: 2, kind: input, shape index: {}]   ;;  %s2274_s3 = inlined_call_operand.vmem [shape: bf16[8,512], index: 3, kind: output, shape index: {}]  }
   0x1   :  { %s2047_s14 = smov 0   ;;  %s2049_s15 = smov 0  }
   0x2   :  { %s2051_s16 = smov 0  }
   0x3 LB: > { %s25_s17 = sadd.s32 1, %s2015_s15  ;;  %p48_p1 = scmp.ne.s32.totalorder %s2007_s13, %s2003_s12  ;;  %s2019_s16 = sphi %s2051_s16, %s13_s16   ;;  %s2015_s15 = sphi %s2049_s15, %s2278_s15   ;;  %s2011_s14 = sphi %s2047_s14, %s2277_s14   ;;  %s2007_s13 = sphi %s2045_s13, %s2276_s13   ;;  %s2003_s12 = sphi %s2043_s12, %s2275_s12  }
   0x4   : > { %p26_p0 = scmp.ge.s32.totalorder %s25_s17, 2  ;;  %p49_p2 = scmp.eq.s32.totalorder %s2019_s16, 0 }
   0x5   : > { %s41_s19 = sadd.s32 1, %s2007_s13  ;;  %p1578_p5 = scmp.ge.s32.totalorder %s2019_s16, 2 }
   0x6   : > { %s2280_s17 = smov (%p26_p0, %s25_s17), 0  ;;  %p50_p3 = por %p49_p2, %p48_p1 }
   0x7   : > { %s37_s18 = ssub.s32 %s2015_s15, %s2280_s17  ;;  %164 = sbr.rel (%p1578_p5) target bundleno = 21 (0x15), region = 20 }
   0x8   : > { %p39_p4 = scmp.eq.s32.totalorder %s37_s18, 0 }
   0xa   : > { %s2078_s20 = scalar_select %p39_p4, %s2007_s13, %s41_s19  }
   0xe   : > { %167 = sbr.rel (!%p50_p3) target bundleno = 21 (0x15), region = 24  ;;  %s169_s21 = sand.u32 (%p50_p3), 1, %s2007_s13  }
   0xf   : > { %s1580_s22 = sshll.u32 (%p50_p3), %s2015_s15, 2  ;;  %s1579_s23 = sshll.u32 (%p50_p3), %s169_s21, 4 }
  0x10   : > { %s176_s26 = scalar_lea.vmem (%p50_p3), %s2271_s0, %s1580_s22  ;;  %s171_s27 = scalar_lea.vmem (%p50_p3), [#allocation4], %s1579_s23 }
  0x11   : > { %v192_v0 = vld [vmem:[%s176_s26] sm:$0xf] (%p50_p3)  ;;  %v194_v1 = vld [vmem:[%s176_s26 + $0x8] sm:$0xf] (%p50_p3)  ;;  %v196_v2 = vld [vmem:[%s176_s26 + $0x10] sm:$0xf] (%p50_p3) }
  0x12   : > { %193 = vst [vmem:[%s171_s27] sm:$0xf] (%p50_p3), %v192_v0  ;;  %195 = vst [vmem:[%s171_s27 + $0x4] sm:$0xf] (%p50_p3), %v194_v1  ;;  %v198_v3 = vld [vmem:[%s176_s26 + $0x18] sm:$0xf] (%p50_p3) }
  0x13   : > { %197 = vst [vmem:[%s171_s27 + $0x8] sm:$0xf] (%p50_p3), %v196_v2  ;;  %199 = vst [vmem:[%s171_s27 + $0xc] sm:$0xf] (%p50_p3), %v198_v3 }
  0x15 PF: > { %p1581_p6 = scmp.ge.s32.totalorder %s2019_s16, 1  ;;  %p242_p7 = scmp.lt.s32.totalorder %s2019_s16, 3 }
  0x17   : > { %p243_p8 = pnand %p1581_p6, %p242_p7 }
  0x18   : > { %s249_s28 = sand.u32 (!%p243_p8), 1, %s2003_s12   ;;  %p291_p9 = scmp.lt.s32.totalorder (!%p243_p8), %s2011_s14, 1 }
  0x19   : > { %246 = sbr.rel (%p243_p8) target bundleno = 402 (0x192), region = 69  ;;  %s1582_s29 = sshll.u32 (!%p243_p8), %s249_s28, 4 }
  0x1a   : > { %s2096_s8 = scalar_lea.vmem (!%p243_p8), [#allocation4], %s1582_s29  ;;  %p1585_p10 = scmp.ne.s32.totalorder (!%p243_p8), %s2011_s14, 0 }
  0x20   : > { %s292_s30 = scalar_select %p291_p9, %s2011_s14, 1 }
  0x21   : > { %318 = sbr.rel (%p1585_p10) target bundleno = 40 (0x28), region = 77  ;;  %v2021_v4 = vmov (!%p1585_p10), 0.0  }
  0x22   : > { %s1738_s4 = sshll.u32 %s292_s30, 10  ;;  %319 = vst [vmem:[#allocation3] sm:$0xff] (!%p1585_p10), %v2021_v4  ;;  %320 = vst [vmem:[#allocation3 + $0x8] sm:$0xff] (!%p1585_p10), %v2021_v4 }
  0x23   : > { %s2094_s7 = scalar_lea.vmem %s2272_s1, %s1738_s4  ;;  %321 = vst [vmem:[#allocation3 + $0x10] sm:$0xff] (!%p1585_p10), %v2021_v4  ;;  %322 = vst [vmem:[#allocation3 + $0x18] sm:$0xff] (!%p1585_p10), %v2021_v4 }
  0x28 PF: > { %v1783_v5 = vld [vmem:[%s2094_s7 + $0x4] ss:$16 sps:$4 sm:$0xff]   ;;  %v1787_v7 = vld [vmem:[%s2094_s7] ss:$16 sps:$4 sm:$0xff]   ;;  %v2022_v43 = vmov 1935823168   ;;  %v387_v45 = vlaneseq }
  0x29   : > { %v1785_v6 = vld [vmem:[%s2094_s7 + $0x204] ss:$16 sps:$4 sm:$0xff]   ;;  %1228 = vmatprep.subr.bf16.mxu0 %v1783_v5  ;;  %v1788_v8 = vld [vmem:[%s2094_s7 + $0x200] ss:$16 sps:$4 sm:$0xff]   ;;  %v385_v44 = vunpack.c.l.s4 %v2022_v43  ;;  %v1879_v62 = vld [vmem:[%s2096_s8 + $0x8] ss:$0 sps:$4 sm:$0xff]  }
  0x2a   : > { %1269 = vmatprep.subr.bf16.mxu1 %v1785_v6  ;;  %v1789_v9 = vld [vmem:[%s2094_s7 + $0x24] ss:$16 sps:$4 sm:$0xff]   ;;  %1229 = vmatpush1.bf16.msra.mxu0 %v1787_v7  ;;  %v1793_v11 = vld [vmem:[%s2094_s7 + $0x20] ss:$16 sps:$4 sm:$0xff]   ;;  %v2141_v51 = vshrl.u32 %v387_v45, 7  ;;  %p1731_p11 = scmp.ne.s32.totalorder %s2011_s14, 1 }
  0x2b   : > { %1270 = vmatpush1.bf16.msra.mxu1 %v1788_v8  ;;  %v1791_v10 = vld [vmem:[%s2094_s7 + $0x224] ss:$16 sps:$4 sm:$0xff]   ;;  %1230 = vmatprep.subr.bf16.mxu0 %v1789_v9  ;;  %v1794_v12 = vld [vmem:[%s2094_s7 + $0x220] ss:$16 sps:$4 sm:$0xff]   ;;  %v386_v50 = vunpack.c.0.s8 %v385_v44  ;;  %v1880_v3 = vld [vmem:[%s2096_s8 + $0xc] ss:$0 sps:$4 sm:$0xff]  }
  0x2c   : > { %1271 = vmatprep.subr.bf16.mxu1 %v1791_v10  ;;  %v1795_v13 = vld [vmem:[%s2094_s7 + $0x44] ss:$16 sps:$4 sm:$0xff]   ;;  %v1799_v15 = vld [vmem:[%s2094_s7 + $0x40] ss:$16 sps:$4 sm:$0xff]   ;;  %v1911_v43 = vld [vmem:[%s2094_s7 + $0x8c] ss:$16 sps:$4 sm:$0xff]  }
  0x2d   : > { %v1797_v14 = vld [vmem:[%s2094_s7 + $0x244] ss:$16 sps:$4 sm:$0xff]   ;;  %v1800_v16 = vld [vmem:[%s2094_s7 + $0x240] ss:$16 sps:$4 sm:$0xff]   ;;  %v389_v56 = vsub.s32 %v386_v50, %v2141_v51  ;;  %v1914_v44 = vld [vmem:[%s2094_s7 + $0x28c] ss:$16 sps:$4 sm:$0xff]  }
  0x2e   : > { %1231 = vmatpush1.bf16.msra.mxu0 %v1793_v11  ;;  %v1801_v17 = vld [vmem:[%s2094_s7 + $0x64] ss:$16 sps:$4 sm:$0xff]   ;;  %v1805_v19 = vld [vmem:[%s2094_s7 + $0x60] ss:$16 sps:$4 sm:$0xff]   ;;  %v1909_v45 = vld [vmem:[%s2094_s7 + $0x88] ss:$16 sps:$4 sm:$0xff]  }
  0x2f   : > { %1272 = vmatpush1.bf16.msra.mxu1 %v1794_v12  ;;  %1232 = vmatprep.subr.bf16.mxu0 %v1795_v13  ;;  %v1803_v18 = vld [vmem:[%s2094_s7 + $0x264] ss:$16 sps:$4 sm:$0xff]   ;;  %v1806_v20 = vld [vmem:[%s2094_s7 + $0x260] ss:$16 sps:$4 sm:$0xff]   ;;  %v390_v2 = vrot.slane %v1879_v62, %v389_v56  ;;  %v420_v6 = vrot.slane %v1880_v3, %v389_v56  ;;  %v1918_v50 = vld [vmem:[%s2094_s7 + $0x2a8] ss:$16 sps:$4 sm:$0xff]  }
  0x30   : > { %1273 = vmatprep.subr.bf16.mxu1 %v1797_v14  ;;  %v1807_v21 = vld [vmem:[%s2094_s7 + $0x84] ss:$16 sps:$4 sm:$0xff]   ;;  %v1811_v23 = vld [vmem:[%s2094_s7 + $0x80] ss:$16 sps:$4 sm:$0xff]   ;;  %v1929_v56 = vld [vmem:[%s2094_s7 + $0xec] ss:$16 sps:$4 sm:$0xff]  }
  0x31   : > { %v1809_v22 = vld [vmem:[%s2094_s7 + $0x284] ss:$16 sps:$4 sm:$0xff]   ;;  %v1812_v24 = vld [vmem:[%s2094_s7 + $0x280] ss:$16 sps:$4 sm:$0xff]   ;;  %v391_v7 = vcombine.high %v390_v2, %v390_v2  ;;  %v421_v10 = vcombine.low %v420_v6, %v420_v6  ;;  %v1933_v62 = vld [vmem:[%s2094_s7 + $0x108] ss:$16 sps:$4 sm:$0xff]  }
  0x32   : > { %1233 = vmatpush1.bf16.msra.mxu0 %v1799_v15  ;;  %v1813_v25 = vld [vmem:[%s2094_s7 + $0xa4] ss:$16 sps:$4 sm:$0xff]   ;;  %v1817_v27 = vld [vmem:[%s2094_s7 + $0xa0] ss:$16 sps:$4 sm:$0xff]   ;;  %v1942_v3 = vld [vmem:[%s2094_s7 + $0x328] ss:$16 sps:$4 sm:$0xff]  }
  0x33   : > { %1274 = vmatpush1.bf16.msra.mxu1 %v1800_v16  ;;  %1234 = vmatprep.subr.bf16.mxu0 %v1801_v17  ;;  %v1815_v26 = vld [vmem:[%s2094_s7 + $0x2a4] ss:$16 sps:$4 sm:$0xff]   ;;  %v1818_v28 = vld [vmem:[%s2094_s7 + $0x2a0] ss:$16 sps:$4 sm:$0xff]  }
  0x34   : > { %1275 = vmatprep.subr.bf16.mxu1 %v1803_v18  ;;  %v1819_v29 = vld [vmem:[%s2094_s7 + $0xc4] ss:$16 sps:$4 sm:$0xff]   ;;  %v1823_v31 = vld [vmem:[%s2094_s7 + $0xc0] ss:$16 sps:$4 sm:$0xff]  }
  0x35   : > { %v1821_v30 = vld [vmem:[%s2094_s7 + $0x2c4] ss:$16 sps:$4 sm:$0xff]   ;;  %v1824_v32 = vld [vmem:[%s2094_s7 + $0x2c0] ss:$16 sps:$4 sm:$0xff]  }
  0x36   : > { %1235 = vmatpush1.bf16.msra.mxu0 %v1805_v19  ;;  %v1825_v33 = vld [vmem:[%s2094_s7 + $0xe4] ss:$16 sps:$4 sm:$0xff]   ;;  %v1829_v35 = vld [vmem:[%s2094_s7 + $0xe0] ss:$16 sps:$4 sm:$0xff]  }
  0x37   : > { %1276 = vmatpush1.bf16.msra.mxu1 %v1806_v20  ;;  %1236 = vmatprep.subr.bf16.mxu0 %v1807_v21  ;;  %v1827_v34 = vld [vmem:[%s2094_s7 + $0x2e4] ss:$16 sps:$4 sm:$0xff]   ;;  %v1830_v36 = vld [vmem:[%s2094_s7 + $0x2e0] ss:$16 sps:$4 sm:$0xff]  }
  0x38   : > { %1277 = vmatprep.subr.bf16.mxu1 %v1809_v22  ;;  %v1831_v37 = vld [vmem:[%s2094_s7 + $0x104] ss:$16 sps:$4 sm:$0xff]   ;;  %v1835_v39 = vld [vmem:[%s2094_s7 + $0x100] ss:$16 sps:$4 sm:$0xff]  }
  0x39   : > { %v1833_v38 = vld [vmem:[%s2094_s7 + $0x304] ss:$16 sps:$4 sm:$0xff]   ;;  %v1836_v40 = vld [vmem:[%s2094_s7 + $0x300] ss:$16 sps:$4 sm:$0xff]  }
  0x3a   : > { %1237 = vmatpush1.bf16.msra.mxu0 %v1811_v23  ;;  %v1837_v41 = vld [vmem:[%s2094_s7 + $0x124] ss:$16 sps:$4 sm:$0xff]   ;;  %v1841_v46 = vld [vmem:[%s2094_s7 + $0x120] ss:$16 sps:$4 sm:$0xff]  }
  0x3b   : > { %1278 = vmatpush1.bf16.msra.mxu1 %v1812_v24  ;;  %1238 = vmatprep.subr.bf16.mxu0 %v1813_v25  ;;  %v1839_v42 = vld [vmem:[%s2094_s7 + $0x324] ss:$16 sps:$4 sm:$0xff]   ;;  %v1842_v47 = vld [vmem:[%s2094_s7 + $0x320] ss:$16 sps:$4 sm:$0xff]   ;;  %v1887_v25 = vld [vmem:[%s2094_s7 + $0xc] ss:$16 sps:$4 sm:$0xff]  }
  0x3c   : > { %1279 = vmatprep.subr.bf16.mxu1 %v1815_v26  ;;  %v1843_v48 = vld [vmem:[%s2094_s7 + $0x144] ss:$16 sps:$4 sm:$0xff]   ;;  %v1847_v52 = vld [vmem:[%s2094_s7 + $0x140] ss:$16 sps:$4 sm:$0xff]   ;;  %v1890_v26 = vld [vmem:[%s2094_s7 + $0x20c] ss:$16 sps:$4 sm:$0xff]  }
  0x3d   : > { %v1845_v49 = vld [vmem:[%s2094_s7 + $0x344] ss:$16 sps:$4 sm:$0xff]   ;;  %v1848_v53 = vld [vmem:[%s2094_s7 + $0x340] ss:$16 sps:$4 sm:$0xff]  }
  0x3e   : > { %1239 = vmatpush1.bf16.msra.mxu0 %v1817_v27  ;;  %v1849_v54 = vld [vmem:[%s2094_s7 + $0x164] ss:$16 sps:$4 sm:$0xff]   ;;  %v1853_v57 = vld [vmem:[%s2094_s7 + $0x160] ss:$16 sps:$4 sm:$0xff]  }
  0x3f   : > { %1280 = vmatpush1.bf16.msra.mxu1 %v1818_v28  ;;  %1240 = vmatprep.subr.bf16.mxu0 %v1819_v29  ;;  %v1851_v55 = vld [vmem:[%s2094_s7 + $0x364] ss:$16 sps:$4 sm:$0xff]   ;;  %v1854_v58 = vld [vmem:[%s2094_s7 + $0x360] ss:$16 sps:$4 sm:$0xff]   ;;  %v1885_v29 = vld [vmem:[%s2094_s7 + $0x8] ss:$16 sps:$4 sm:$0xff]  }
  0x40   : > { %1281 = vmatprep.subr.bf16.mxu1 %v1821_v30  ;;  %v1855_v59 = vld [vmem:[%s2094_s7 + $0x184] ss:$16 sps:$4 sm:$0xff]   ;;  %v1586_v61 = vld.sshfl [vmem:[%s2096_s8] sm:$0x55 pattern:$0x73625140] }
  0x41   : > { %v1857_v60 = vld [vmem:[%s2094_s7 + $0x384] ss:$16 sps:$4 sm:$0xff]   ;;  %1587 = vst.sshfl [vmem:[#allocation2] sm:$0x5 pattern:$0x75316420] %v1586_v61  ;;  %v332_v0 = vcombine.high %v1586_v61, %v1586_v61 }
  0x42   : > { %1241 = vmatpush1.bf16.msra.mxu0 %v1823_v31  ;;  %v1590_v63 = vld.sshfl [vmem:[%s2096_s8 + $0x4] sm:$0x55 pattern:$0x73625140]  ;;  %v1859_v4 = vld [vmem:[%s2094_s7 + $0x180] ss:$16 sps:$4 sm:$0xff]  }
  0x43   : > { %1282 = vmatpush1.bf16.msra.mxu1 %v1824_v32  ;;  %1242 = vmatprep.subr.bf16.mxu0 %v1825_v33  ;;  %v361_v1 = vcombine.low %v1590_v63, %v1590_v63  ;;  %1592 = vst.sshfl [vmem:[#allocation2 + $0x8] sm:$0x50 pattern:$0x75316420] %v1590_v63  ;;  %v1860_v5 = vld [vmem:[%s2094_s7 + $0x380] ss:$16 sps:$4 sm:$0xff]  }
  0x44   : > { %1283 = vmatprep.subr.bf16.mxu1 %v1827_v34  ;;  %1588 = vst.sshfl [vmem:[#allocation2 + $0x8] sm:$0x5 pattern:$0x75316420] %v332_v0  ;;  %v1861_v8 = vld [vmem:[%s2094_s7 + $0x1a4] ss:$16 sps:$4 sm:$0xff]  }
  0x45   : > { %1591 = vst.sshfl [vmem:[#allocation2] sm:$0x50 pattern:$0x75316420] %v361_v1  ;;  %v1863_v9 = vld [vmem:[%s2094_s7 + $0x3a4] ss:$16 sps:$4 sm:$0xff]  }
  0x46   : > { %1243 = vmatpush1.bf16.msra.mxu0 %v1829_v35  ;;  %1594 = vst.sshfl [vmem:[#allocation2] sm:$0xa pattern:$0x75316420] %v390_v2  ;;  %v1865_v11 = vld [vmem:[%s2094_s7 + $0x1a0] ss:$16 sps:$4 sm:$0xff]  }
  0x47   : > { %1284 = vmatpush1.bf16.msra.mxu1 %v1830_v36  ;;  %1244 = vmatprep.subr.bf16.mxu0 %v1831_v37  ;;  %1598 = vst.sshfl [vmem:[#allocation2 + $0x8] sm:$0xa0 pattern:$0x75316420] %v420_v6  ;;  %v1866_v12 = vld [vmem:[%s2094_s7 + $0x3a0] ss:$16 sps:$4 sm:$0xff]  }
  0x48   : > { %1285 = vmatprep.subr.bf16.mxu1 %v1833_v38  ;;  %1595 = vst.sshfl [vmem:[#allocation2 + $0x8] sm:$0xa pattern:$0x75316420] %v391_v7  ;;  %v1867_v13 = vld [vmem:[%s2094_s7 + $0x1c4] ss:$16 sps:$4 sm:$0xff]  }
  0x49   : > { %1597 = vst.sshfl [vmem:[#allocation2] sm:$0xa0 pattern:$0x75316420] %v421_v10  ;;  %v1869_v14 = vld [vmem:[%s2094_s7 + $0x3c4] ss:$16 sps:$4 sm:$0xff]  }
  0x4a   : > { %1245 = vmatpush1.bf16.msra.mxu0 %v1835_v39  ;;  %v1871_v15 = vld [vmem:[%s2094_s7 + $0x1c0] ss:$16 sps:$4 sm:$0xff]   ;;  %v1873_v18 = vld [vmem:[%s2094_s7 + $0x1e4] ss:$16 sps:$4 sm:$0xff]   ;;  %v1888_v30 = vld [vmem:[%s2094_s7 + $0x208] ss:$16 sps:$4 sm:$0xff]  }
  0x4b   : > { %1286 = vmatpush1.bf16.msra.mxu1 %v1836_v40  ;;  %1246 = vmatprep.subr.bf16.mxu0 %v1837_v41  ;;  %v1872_v16 = vld [vmem:[%s2094_s7 + $0x3c0] ss:$16 sps:$4 sm:$0xff]   ;;  %v1875_v19 = vld [vmem:[%s2094_s7 + $0x3e4] ss:$16 sps:$4 sm:$0xff]   ;;  %v1893_v31 = vld [vmem:[%s2094_s7 + $0x2c] ss:$16 sps:$4 sm:$0xff]  }
  0x4c   : > { %1287 = vmatprep.subr.bf16.mxu1 %v1839_v42  ;;  %v1877_v23 = vld [vmem:[%s2094_s7 + $0x1e0] ss:$16 sps:$4 sm:$0xff]   ;;  %v1896_v32 = vld [vmem:[%s2094_s7 + $0x22c] ss:$16 sps:$4 sm:$0xff]   ;;  %v1891_v33 = vld [vmem:[%s2094_s7 + $0x28] ss:$16 sps:$4 sm:$0xff]  }
  0x4d   : > { %v1878_v24 = vld [vmem:[%s2094_s7 + $0x3e0] ss:$16 sps:$4 sm:$0xff]   ;;  %v1894_v34 = vld [vmem:[%s2094_s7 + $0x228] ss:$16 sps:$4 sm:$0xff]   ;;  %v1899_v35 = vld [vmem:[%s2094_s7 + $0x4c] ss:$16 sps:$4 sm:$0xff]  }
  0x4e   : > { %1247 = vmatpush1.bf16.msra.mxu0 %v1841_v46  ;;  %v1902_v36 = vld [vmem:[%s2094_s7 + $0x24c] ss:$16 sps:$4 sm:$0xff]   ;;  %v1897_v37 = vld [vmem:[%s2094_s7 + $0x48] ss:$16 sps:$4 sm:$0xff]  }
  0x4f   : > { %1288 = vmatpush1.bf16.msra.mxu1 %v1842_v47  ;;  %1248 = vmatprep.subr.bf16.mxu0 %v1843_v48  ;;  %v445_v17 = vld [vmem:[#allocation2 + $0x8] sm:$0xff] }
  0x50   : > { %1289 = vmatprep.subr.bf16.mxu1 %v1845_v49  ;;  %v1602_v20 = vcombine.high %v445_v17, %v445_v17  ;;  %v444_v21 = vld [vmem:[#allocation2] sm:$0xff]  ;;  %v2174_v28 = vcombine.low %v445_v17, %v445_v17  ;;  %v1900_v38 = vld [vmem:[%s2094_s7 + $0x248] ss:$16 sps:$4 sm:$0xff]   ;;  %v1905_v39 = vld [vmem:[%s2094_s7 + $0x6c] ss:$16 sps:$4 sm:$0xff]  }
  0x51   : > { %v1600_v22 = vcombine.high %v444_v21, %v444_v21  ;;  %v2172_v27 = vcombine.low %v444_v21, %v444_v21  ;;  %v1908_v40 = vld [vmem:[%s2094_s7 + $0x26c] ss:$16 sps:$4 sm:$0xff]   ;;  %v1903_v41 = vld [vmem:[%s2094_s7 + $0x68] ss:$16 sps:$4 sm:$0xff]  }
  0x52   : > { %1249 = vmatpush1.bf16.msra.mxu0 %v1847_v52  ;;  %1301 = vmatprep.mubr.bf16.mxu1 %v1602_v20  ;;  %v1906_v42 = vld [vmem:[%s2094_s7 + $0x268] ss:$16 sps:$4 sm:$0xff]   ;;  %v1917_v47 = vld [vmem:[%s2094_s7 + $0xac] ss:$16 sps:$4 sm:$0xff]  }
  0x53   : > { %1290 = vmatpush1.bf16.msra.mxu1 %v1848_v53  ;;  %1250 = vmatprep.subr.bf16.mxu0 %v1849_v54  ;;  %v1912_v46 = vld [vmem:[%s2094_s7 + $0x288] ss:$16 sps:$4 sm:$0xff]   ;;  %v1920_v48 = vld [vmem:[%s2094_s7 + $0x2ac] ss:$16 sps:$4 sm:$0xff]  }
  0x54   : > { %1291 = vmatprep.subr.bf16.mxu1 %v1851_v55  ;;  %1260 = vmatprep.mubr.bf16.mxu0 %v1600_v22  ;;  %v1915_v49 = vld [vmem:[%s2094_s7 + $0xa8] ss:$16 sps:$4 sm:$0xff]   ;;  %v1923_v52 = vld [vmem:[%s2094_s7 + $0xcc] ss:$16 sps:$4 sm:$0xff]  }
  0x55   : > { %v1926_v53 = vld [vmem:[%s2094_s7 + $0x2cc] ss:$16 sps:$4 sm:$0xff]   ;;  %v1921_v54 = vld [vmem:[%s2094_s7 + $0xc8] ss:$16 sps:$4 sm:$0xff]  }
  0x56   : > { %1251 = vmatpush1.bf16.msra.mxu0 %v1853_v57  ;;  %v1924_v55 = vld [vmem:[%s2094_s7 + $0x2c8] ss:$16 sps:$4 sm:$0xff]   ;;  %v1932_v57 = vld [vmem:[%s2094_s7 + $0x2ec] ss:$16 sps:$4 sm:$0xff]  }
  0x57   : > { %1292 = vmatpush1.bf16.msra.mxu1 %v1854_v58  ;;  %1252 = vmatprep.subr.bf16.mxu0 %v1855_v59  ;;  %v1927_v58 = vld [vmem:[%s2094_s7 + $0xe8] ss:$16 sps:$4 sm:$0xff]   ;;  %v1938_v61 = vld [vmem:[%s2094_s7 + $0x30c] ss:$16 sps:$4 sm:$0xff]  }
  0x58   : > { %1293 = vmatprep.subr.bf16.mxu1 %v1857_v60  ;;  %v1930_v59 = vld [vmem:[%s2094_s7 + $0x2e8] ss:$16 sps:$4 sm:$0xff]   ;;  %v1935_v60 = vld [vmem:[%s2094_s7 + $0x10c] ss:$16 sps:$4 sm:$0xff]  }
  0x59   : > { %v1936_v63 = vld [vmem:[%s2094_s7 + $0x308] ss:$16 sps:$4 sm:$0xff]   ;;  %v1941_v0 = vld [vmem:[%s2094_s7 + $0x12c] ss:$16 sps:$4 sm:$0xff]  }
  0x5a   : > { %1253 = vmatpush1.bf16.msra.mxu0 %v1859_v4  ;;  %v1944_v1 = vld [vmem:[%s2094_s7 + $0x32c] ss:$16 sps:$4 sm:$0xff]   ;;  %v1939_v2 = vld [vmem:[%s2094_s7 + $0x128] ss:$16 sps:$4 sm:$0xff]  }
  0x5b   : > { %1294 = vmatpush1.bf16.msra.mxu1 %v1860_v5  ;;  %1254 = vmatprep.subr.bf16.mxu0 %v1861_v8  ;;  %v1947_v4 = vld [vmem:[%s2094_s7 + $0x14c] ss:$16 sps:$4 sm:$0xff]   ;;  %v1945_v6 = vld [vmem:[%s2094_s7 + $0x148] ss:$16 sps:$4 sm:$0xff]  }
  0x5c   : > { %1295 = vmatprep.subr.bf16.mxu1 %v1863_v9  ;;  %v1950_v5 = vld [vmem:[%s2094_s7 + $0x34c] ss:$16 sps:$4 sm:$0xff]   ;;  %v1948_v7 = vld [vmem:[%s2094_s7 + $0x348] ss:$16 sps:$4 sm:$0xff]  }
  0x5d   : > { %v1953_v8 = vld [vmem:[%s2094_s7 + $0x16c] ss:$16 sps:$4 sm:$0xff]   ;;  %v1951_v10 = vld [vmem:[%s2094_s7 + $0x168] ss:$16 sps:$4 sm:$0xff]  }
  0x5e   : > { %1255 = vmatpush1.bf16.msra.mxu0 %v1865_v11  ;;  %v1956_v9 = vld [vmem:[%s2094_s7 + $0x36c] ss:$16 sps:$4 sm:$0xff]   ;;  %v1954_v11 = vld [vmem:[%s2094_s7 + $0x368] ss:$16 sps:$4 sm:$0xff]  }
  0x5f   : > { %1296 = vmatpush1.bf16.msra.mxu1 %v1866_v12  ;;  %1256 = vmatprep.subr.bf16.mxu0 %v1867_v13  ;;  %v1959_v12 = vld [vmem:[%s2094_s7 + $0x18c] ss:$16 sps:$4 sm:$0xff]  }
  0x60   : > { %1297 = vmatprep.subr.bf16.mxu1 %v1869_v14  ;;  %v1962_v13 = vld [vmem:[%s2094_s7 + $0x38c] ss:$16 sps:$4 sm:$0xff]   ;;  %v1957_v14 = vld [vmem:[%s2094_s7 + $0x188] ss:$16 sps:$4 sm:$0xff]  }
  0x61   : > { %v1968_v17 = vld [vmem:[%s2094_s7 + $0x3ac] ss:$16 sps:$4 sm:$0xff]  }
  0x62   : > { %1257 = vmatpush1.bf16.msra.mxu0 %v1871_v15  ;;  %v1960_v15 = vld [vmem:[%s2094_s7 + $0x388] ss:$16 sps:$4 sm:$0xff]   ;;  %v1974_v21 = vld [vmem:[%s2094_s7 + $0x3cc] ss:$16 sps:$4 sm:$0xff]  }
  0x63   : > { %1298 = vmatpush1.bf16.msra.mxu1 %v1872_v16  ;;  %1258 = vmatprep.subr.bf16.mxu0 %v1873_v18  ;;  %v1965_v16 = vld [vmem:[%s2094_s7 + $0x1ac] ss:$16 sps:$4 sm:$0xff]   ;;  %v1963_v18 = vld [vmem:[%s2094_s7 + $0x1a8] ss:$16 sps:$4 sm:$0xff]  }
  0x64   : > { %1299 = vmatprep.subr.bf16.mxu1 %v1875_v19  ;;  %v1966_v19 = vld [vmem:[%s2094_s7 + $0x3a8] ss:$16 sps:$4 sm:$0xff]  }
  0x66   : > { %1259 = vmatpush1.bf16.msra.mxu0 %v1877_v23  ;;  %v1972_v23 = vld [vmem:[%s2094_s7 + $0x3c8] ss:$16 sps:$4 sm:$0xff]  }
  0x67   : > { %1300 = vmatpush1.bf16.msra.mxu1 %v1878_v24  ;;  %1310 = vmatprep.subr.bf16.mxu0 %v1887_v25  ;;  %v1977_v24 = vld [vmem:[%s2094_s7 + $0x1ec] ss:$16 sps:$4 sm:$0xff]  }
  0x68   : > { %1351 = vmatprep.subr.bf16.mxu1 %v1890_v26  ;;  %v1980_v25 = vld [vmem:[%s2094_s7 + $0x3ec] ss:$16 sps:$4 sm:$0xff]   ;;  %v1975_v26 = vld [vmem:[%s2094_s7 + $0x1e8] ss:$16 sps:$4 sm:$0xff]  }
  0x69   : > { %1261 = vmatmul.mubr.bf16.vlgmr.msra.gmra.mrb[0].mxu0 %v2172_v27 }
  0x6a   : > { %1302 = vmatmul.mubr.bf16.vlgmr.msra.gmra.mrb[0].mxu1 %v2174_v28  ;;  %1311 = vmatpush1.bf16.msra.mxu0 %v1885_v29  ;;  %v1978_v29 = vld [vmem:[%s2094_s7 + $0x3e8] ss:$16 sps:$4 sm:$0xff]  }
  0x6b   : > { %1352 = vmatpush1.bf16.msra.mxu1 %v1888_v30  ;;  %1312 = vmatprep.subr.bf16.mxu0 %v1893_v31  ;;  %v440_v31 = vld [vmem:[#allocation3] sm:$0xff] }
  0x6c   : > { %1353 = vmatprep.subr.bf16.mxu1 %v1896_v32  ;;  %1342 = vmatprep.mubr.bf16.mxu0 %v1600_v22  ;;  %v1969_v22 = vld [vmem:[%s2094_s7 + $0x1c8] ss:$16 sps:$4 sm:$0xff]  }
  0x6d   : > { %1383 = vmatprep.mubr.bf16.mxu1 %v1602_v20  ;;  %v1971_v20 = vld [vmem:[%s2094_s7 + $0x1cc] ss:$16 sps:$4 sm:$0xff]  }
  0x6e   : > { %1313 = vmatpush1.bf16.msra.mxu0 %v1891_v33 }
  0x6f   : > { %1354 = vmatpush1.bf16.msra.mxu1 %v1894_v34  ;;  %1314 = vmatprep.subr.bf16.mxu0 %v1899_v35  ;;  %v441_v35 = vld [vmem:[#allocation3 + $0x8] sm:$0xff] }
  0x70   : > { %1355 = vmatprep.subr.bf16.mxu1 %v1902_v36 }
  0x72   : > { %1315 = vmatpush1.bf16.msra.mxu0 %v1897_v37 }
  0x73   : > { %1356 = vmatpush1.bf16.msra.mxu1 %v1900_v38  ;;  %1316 = vmatprep.subr.bf16.mxu0 %v1905_v39 }
  0x74   : > { %1357 = vmatprep.subr.bf16.mxu1 %v1908_v40 }
  0x76   : > { %1317 = vmatpush1.bf16.msra.mxu0 %v1903_v41 }
  0x77   : > { %1358 = vmatpush1.bf16.msra.mxu1 %v1906_v42  ;;  %1318 = vmatprep.subr.bf16.mxu0 %v1911_v43 }
  0x78   : > { %1359 = vmatprep.subr.bf16.mxu1 %v1914_v44 }
  0x7a   : > { %1319 = vmatpush1.bf16.msra.mxu0 %v1909_v45 }
  0x7b   : > { %1360 = vmatpush1.bf16.msra.mxu1 %v1912_v46  ;;  %1320 = vmatprep.subr.bf16.mxu0 %v1917_v47  ;;  %v443_v47 = vld [vmem:[#allocation3 + $0x18] sm:$0xff] }
  0x7c   : > { %1361 = vmatprep.subr.bf16.mxu1 %v1920_v48 }
  0x7e   : > { %1321 = vmatpush1.bf16.msra.mxu0 %v1915_v49 }
  0x7f   : > { %1362 = vmatpush1.bf16.msra.mxu1 %v1918_v50  ;;  %1322 = vmatprep.subr.bf16.mxu0 %v1923_v52 }
  0x80   : > { %1363 = vmatprep.subr.bf16.mxu1 %v1926_v53 }
  0x82   : > { %1323 = vmatpush1.bf16.msra.mxu0 %v1921_v54 }
  0x83   : > { %1364 = vmatpush1.bf16.msra.mxu1 %v1924_v55  ;;  %1324 = vmatprep.subr.bf16.mxu0 %v1929_v56 }
  0x84   : > { %1365 = vmatprep.subr.bf16.mxu1 %v1932_v57  ;;  %v1408_v57 = vld [vmem:[%s2273_s2] sm:$0xf] (!%p1731_p11) }
  0x86   : > { %1325 = vmatpush1.bf16.msra.mxu0 %v1927_v58  ;;  %v1412_v58 = vsub.s32 (!%p1731_p11), 0, %v2141_v51 }
  0x87   : > { %1366 = vmatpush1.bf16.msra.mxu1 %v1930_v59  ;;  %1326 = vmatprep.subr.bf16.mxu0 %v1935_v60  ;;  %v1416_v59 = vsub.s32 (!%p1731_p11), 1, %v2141_v51 }
  0x88   : > { %1367 = vmatprep.subr.bf16.mxu1 %v1938_v61 }
  0x8a   : > { %1327 = vmatpush1.bf16.msra.mxu0 %v1933_v62  ;;  %v1420_v62 = vsub.s32 (!%p1731_p11), 2, %v2141_v51 }
  0x8b   : > { %1368 = vmatpush1.bf16.msra.mxu1 %v1936_v63  ;;  %1328 = vmatprep.subr.bf16.mxu0 %v1941_v0  ;;  %v1424_v63 = vsub.s32 (!%p1731_p11), 3, %v2141_v51  ;;  %v1413_v0 = vrot.slane (!%p1731_p11), %v1408_v57, %v1412_v58 }
  0x8c   : > { %1369 = vmatprep.subr.bf16.mxu1 %v1944_v1  ;;  %v1417_v1 = vrot.slane (!%p1731_p11), %v1408_v57, %v1416_v59 }
  0x8e   : > { %1329 = vmatpush1.bf16.msra.mxu0 %v1939_v2 }
  0x8f   : > { %1370 = vmatpush1.bf16.msra.mxu1 %v1942_v3  ;;  %1330 = vmatprep.subr.bf16.mxu0 %v1947_v4  ;;  %v1421_v4 = vrot.slane (!%p1731_p11), %v1408_v57, %v1420_v62 }
  0x90   : > { %1371 = vmatprep.subr.bf16.mxu1 %v1950_v5  ;;  %v1425_v5 = vrot.slane (!%p1731_p11), %v1408_v57, %v1424_v63 }
  0x92   : > { %1331 = vmatpush1.bf16.msra.mxu0 %v1945_v6 }
  0x93   : > { %1372 = vmatpush1.bf16.msra.mxu1 %v1948_v7  ;;  %1332 = vmatprep.subr.bf16.mxu0 %v1953_v8 }
  0x94   : > { %1373 = vmatprep.subr.bf16.mxu1 %v1956_v9 }
  0x96   : > { %1333 = vmatpush1.bf16.msra.mxu0 %v1951_v10 }
  0x97   : > { %1374 = vmatpush1.bf16.msra.mxu1 %v1954_v11  ;;  %1334 = vmatprep.subr.bf16.mxu0 %v1959_v12 }
  0x98   : > { %1375 = vmatprep.subr.bf16.mxu1 %v1962_v13 }
  0x9a   : > { %1335 = vmatpush1.bf16.msra.mxu0 %v1957_v14 }
  0x9b   : > { %1376 = vmatpush1.bf16.msra.mxu1 %v1960_v15  ;;  %1336 = vmatprep.subr.bf16.mxu0 %v1965_v16 }
  0x9c   : > { %1377 = vmatprep.subr.bf16.mxu1 %v1968_v17 }
  0x9e   : > { %1337 = vmatpush1.bf16.msra.mxu0 %v1963_v18 }
  0x9f   : > { %1378 = vmatpush1.bf16.msra.mxu1 %v1966_v19  ;;  %1338 = vmatprep.subr.bf16.mxu0 %v1971_v20 }
  0xa0   : > { %1379 = vmatprep.subr.bf16.mxu1 %v1974_v21 }
  0xa2   : > { %1339 = vmatpush1.bf16.msra.mxu0 %v1969_v22 }
  0xa3   : > { %1380 = vmatpush1.bf16.msra.mxu1 %v1972_v23  ;;  %1340 = vmatprep.subr.bf16.mxu0 %v1977_v24 }
  0xa4   : > { %1381 = vmatprep.subr.bf16.mxu1 %v1980_v25 }
  0xa6   : > { %1341 = vmatpush1.bf16.msra.mxu0 %v1975_v26 }
  0xa7   : > { %1382 = vmatpush1.bf16.msra.mxu1 %v1978_v29 }
  0xa9   : > { %1343 = vmatmul.mubr.bf16.vlgmr.msra.gmra.mrb[4].mxu0 %v2172_v27  ;;  %v442_v27 = vld [vmem:[#allocation3 + $0x10] sm:$0xff] }
  0xaa   : > { %1384 = vmatmul.mubr.bf16.vlgmr.msra.gmra.mrb[4].mxu1 %v2174_v28 }
 0x13c   : > { %v1262_v30 = vpop.f32.mrb[0].mxu0 }
 0x13d   : > { %v1303_v32 = vpop.f32.mrb[0].mxu1  ;;  %v1264_v34 = vpop.f32.mrb[1].mxu0 }
 0x13e   : > { %v1304_v33 = vadd.f32 %v1303_v32, %v1262_v30  ;;  %v1305_v36 = vpop.f32.mrb[1].mxu1  ;;  %v1266_v38 = vpop.f32.mrb[2].mxu0 }
 0x13f   : > { %v1306_v37 = vadd.f32 %v1305_v36, %v1264_v34  ;;  %v1307_v39 = vpop.f32.mrb[2].mxu1  ;;  %v1267_v41 = vpop.f32.mrb[3].mxu0 }
 0x140   : > { %v1392_v40 = vadd.f32 %v1304_v33, %v440_v31  ;;  %v1308_v42 = vpop.f32.mrb[3].mxu1 }
 0x141   : > { %v1393_v43 = vadd.f32 %v1306_v37, %v441_v35 }
 0x142   : > { %1396 = vst [vmem:[#allocation3] sm:$0xff] %v1392_v40 }
 0x143   : > { %1397 = vst [vmem:[#allocation3 + $0x8] sm:$0xff] %v1393_v43 }
 0x149   : > { %v1404_v60 = vld [vmem:[#allocation3] sm:$0xff] (!%p1731_p11) }
 0x14a   : > { %v1405_v61 = vld [vmem:[#allocation3 + $0x8] sm:$0xff] (!%p1731_p11)  ;;  %v1430_v6 = vadd.f32 (!%p1731_p11), %v1413_v0, %v1404_v60 }
 0x14b   : > { %v1431_v7 = vadd.f32 (!%p1731_p11), %v1417_v1, %v1405_v61 }
 0x14c   : > { %v1434_v10 = vmax.f32 (!%p1731_p11), %v1430_v6, 0.0 }
 0x14d   : > { %v1435_v11 = vmax.f32 (!%p1731_p11), %v1431_v7, 0.0 }
 0x14f   : > { %v1739_v14 = vpack.c.bf16 (!%p1731_p11), %v1435_v11, %v1434_v10 }
 0x151   : > { %1454 = vst [vmem:[%s2274_s3] sm:$0xff] (!%p1731_p11), %v1739_v14 }
 0x17c   : > { %v1344_v44 = vpop.f32.mrb[4].mxu0 }
 0x17d   : > { %v1385_v45 = vpop.f32.mrb[4].mxu1  ;;  %v1346_v46 = vpop.f32.mrb[5].mxu0  ;;  %1403 = sbr.rel (%p1731_p11) target bundleno = 402 (0x192), region = 81 }
 0x17e   : > { %v1386_v28 = vadd.f32 %v1385_v45, %v1344_v44  ;;  %v1387_v48 = vpop.f32.mrb[5].mxu1  ;;  %v1348_v50 = vpop.f32.mrb[6].mxu0 }
 0x17f   : > { %v1388_v49 = vadd.f32 %v1387_v48, %v1346_v46  ;;  %v1389_v52 = vpop.f32.mrb[6].mxu1  ;;  %v1349_v54 = vpop.f32.mrb[7].mxu0 }
 0x180   : > { %v1394_v53 = vadd.f32 %v1386_v28, %v442_v27  ;;  %v1390_v55 = vpop.f32.mrb[7].mxu1 }
 0x181   : > { %v1395_v56 = vadd.f32 %v1388_v49, %v443_v47 }
 0x182   : > { %1398 = vst [vmem:[#allocation3 + $0x10] sm:$0xff] %v1394_v53 }
 0x183   : > { %1399 = vst [vmem:[#allocation3 + $0x18] sm:$0xff] %v1395_v56 }
 0x189   : > { %v1406_v2 = vld [vmem:[#allocation3 + $0x10] sm:$0xff] }
 0x18a   : > { %v1407_v3 = vld [vmem:[#allocation3 + $0x18] sm:$0xff]  ;;  %v1432_v8 = vadd.f32 %v1421_v4, %v1406_v2 }
 0x18b   : > { %v1433_v9 = vadd.f32 %v1425_v5, %v1407_v3 }
 0x18c   : > { %v1436_v12 = vmax.f32 %v1432_v8, 0.0 }
 0x18d   : > { %v1437_v13 = vmax.f32 %v1433_v9, 0.0 }
 0x18f   : > { %v1740_v15 = vpack.c.bf16 %v1437_v13, %v1436_v12 }
 0x191   : > { %1455 = vst [vmem:[%s2274_s3 + $0x8] sm:$0xff] %v1740_v15 }
 0x192 PF: > { %s13_s16 = sadd.s32 1, %s2019_s16   ;;  %s2275_s12 = smov %s2007_s13 }
 0x193   : > { %p10_p12 = scmp.ge.s32.totalorder %s13_s16, 4   ;;  %s2276_s13 = smov %s2078_s20 }
 0x194   : > { %s2277_s14 = smov %s2015_s15  ;;  %s2278_s15 = smov %s2280_s17 }
 0x195   :  { %12 = sbr.rel (!%p10_p12) target bundleno = 3 (0x3), region = 125 }

</bundles_post_ra>
